<compile_context>
chip_gen: v5e
topology: v5e:2x2
jax: 0.10.0
libtpu: 0.0.40
codegen_flags: <defaults>
</compile_context>

<pallas_src>
import functools
import math

import numpy as np
import jax
import jax.numpy as jnp
from jax.experimental import pallas as pl
from jax.experimental.pallas import tpu as pltpu


def _round_up(x, m):
    return ((x + m - 1) // m) * m


def _disco_kernel(psi_ref, *refs, K, Hp, T_INNER, P_TILE):
    """One (outer longitude tile t, reduction chunk r) grid step.

    psi_ref  : (K*Hp, CH)                bf16  chunk r of the zero-padded filter basis
    x refs   : T_INNER x (CH, P_TILE*BC) bf16  row windows of the pre-rolled input slab,
                                               inner tile i at row-block t*T_INNER+i+r
    wbk_ref  : (K, B*Cin, B*Cout_p)      f32   compact channel weights (B-block-diag;
                                               == wf exactly when B == 1)
    bias_ref : (1, P_TILE*B*Cout_p)      f32
    out_ref  : (T_INNER, Hp, P_TILE*B*Cout_p)  f32
    acc_ref  : (T_INNER, K*Hp, P_TILE*BC)      f32  spatial-contraction accumulator
    """
    x_refs = refs[:T_INNER]
    wbk_ref, bias_ref, out_ref, acc_ref = refs[T_INNER:]
    r = pl.program_id(1)

    @pl.when(r == 0)
    def _init():
        acc_ref[...] = jnp.zeros_like(acc_ref)

    # Spatial (filter-basis) contraction: the resident psi chunk is reused by all
    # T_INNER inner tiles and all P_TILE pre-rolled column blocks of each matmul.
    psi = psi_ref[...]
    for i in range(T_INNER):
        acc_ref[i] += jnp.dot(psi, x_refs[i][...],
                              preferred_element_type=jnp.float32)

    @pl.when(r == pl.num_programs(1) - 1)
    def _finalize():
        bci = wbk_ref.shape[1]          # B*Cin
        bco = wbk_ref.shape[2]          # B*Cout_p
        jw = out_ref.shape[2]           # P_TILE*B*Cout_p
        for i in range(T_INNER):
            # init with bias, then accumulate the K x P_TILE compact products directly
            # into out_ref (no large register-resident epilogue accumulator).
            out_ref[i] = jnp.zeros((Hp, jw), jnp.float32) + bias_ref[...]
            for j in range(P_TILE):
                for k in range(K):
                    out_ref[i, :, j * bco:(j + 1) * bco] += jnp.dot(
                        acc_ref[i, k * Hp:(k + 1) * Hp, j * bci:(j + 1) * bci],
                        wbk_ref[k], preferred_element_type=jnp.float32)


def _vmem_capacity_bytes():
    try:
        return int(pltpu.get_tpu_info().vmem_capacity_bytes)
    except Exception:
        return 64 * 1024 * 1024          # conservative: v7x per-TensorCore VMEM


def _estimate_vmem(K, Hp, CH, p_tile, t_inner, bc, b, c_in, c_out_p):
    lanes = p_tile * bc
    jw = p_tile * b * c_out_p
    psi_blk = 2 * (K * Hp) * CH * 2                       # double-buffered bf16
    x_blk = 2 * t_inner * CH * lanes * 2                  # double-buffered bf16 per inner tile
    consts = 2 * (K * (b * c_in) * (b * c_out_p) + jw) * 4
    acc = t_inner * (K * Hp) * lanes * 4
    out = 2 * t_inner * Hp * jw * 4
    return psi_blk + x_blk + consts + acc + out


def _choose_tiling(w_out, step, bc, b, c_in, c_out, K, H_out, budget, lane_target=256):
    """P_TILE sets the MXU lane width (target 256 for v6e/v7x); T_INNER adds psi reuse
    with no wrapper-side duplication.  Keeps >=2 outer tiles when possible so the
    'parallel' grid axis can feed both v7x TensorCores."""
    Hp = _round_up(H_out, 8)
    divs = [d for d in range(1, w_out + 1) if w_out % d == 0]
    p_cands = [d for d in divs if d * bc >= lane_target] or [divs[-1]]
    p_tile = p_cands[0]
    q = 128 // math.gcd(p_tile * b, 128)
    c_out_p = _round_up(c_out, q)
    CH = p_tile * step
    rem = w_out // p_tile
    t_inner = 1
    for cand in sorted((d for d in range(1, rem + 1) if rem % d == 0), reverse=True):
        if rem >= 2 and rem // cand < 2:
            continue                                       # keep >= 2 outer tiles
        if _estimate_vmem(K, Hp, CH, p_tile, cand, bc, b, c_in, c_out_p) <= budget:
            t_inner = cand
            break
    return p_tile, t_inner


def disco_conv_s2(x, psi_dense, quad_w, weight, bias, *, nlon_out, groups,
                  p_tile=None, t_inner=None):
    """Returns (conv(x), x), matching the PyTorch module forward."""
    B, C_in, H_in, W_in = x.shape
    K, H_out, _ = psi_dense.shape
    W_out = nlon_out
    assert W_in % W_out == 0
    pscale = W_in // W_out
    C_out = weight.shape[0]
    Cg = C_in // groups
    Og = C_out // groups

    M = W_in * H_in
    BC = B * C_in
    step = pscale * H_in                   # row shift between adjacent output longitudes
    Hp = _round_up(H_out, 8)               # sublane-pad filter rows so per-k acc slices
                                           # stay (8,128)-tile aligned

    vmem_cap = _vmem_capacity_bytes()
    budget = min(vmem_cap // 2, 48 * 1024 * 1024)
    auto_p, auto_t = _choose_tiling(W_out, step, BC, B, C_in, C_out, K, H_out, budget)
    P_TILE = p_tile if p_tile is not None else auto_p
    T_INNER = t_inner if t_inner is not None else auto_t
    assert W_out % (P_TILE * T_INNER) == 0

    CH = P_TILE * step                     # reduction chunk == row stride between tiles
    num_tiles = W_out // P_TILE            # total longitude tiles
    num_outer = num_tiles // T_INNER
    num_chunks = M // CH
    # TODO(synk): realistic S2 grids (e.g. H_in=721, H_out=361) need explicit padding of
    # step/CH onto the (8,128) tile grid instead of these asserts.
    assert CH % 128 == 0 and (P_TILE * BC) % 128 == 0 and step % 8 == 0

    q = 128 // math.gcd(P_TILE * B, 128)
    C_out_p = _round_up(C_out, q)          # out slab last dim = multiple of 128 lanes
    JW = P_TILE * B * C_out_p

    # --- glue: parameter / layout setup --------------------------------------
    # quadrature weights folded in once (kernel never re-applies them)
    xq = x.astype(jnp.float32) * quad_w.reshape(1, 1, H_in, 1)
    # rows m = wi*H_in + hi, cols bc = b*C_in + c
    xt = jnp.transpose(xq, (3, 2, 0, 1)).reshape(M, BC)
    # P_TILE pre-rolled column copies (sets the MXU lane width to P_TILE*BC); extra psi
    # reuse comes from T_INNER, which needs NO further wrapper-side duplication.  Rows
    # doubled so every shifted window is a contiguous, block-aligned read.
    x3 = jnp.concatenate([jnp.roll(xt, -j * step, axis=0) for j in range(P_TILE)], axis=1)
    x3d = jnp.concatenate([x3, x3], axis=0).astype(jnp.bfloat16)       # (2M, P_TILE*BC)

    # psi: (K, Hout, Hin*Win) -> (K*Hp, Win*Hin): rows zero-padded Hout->Hp, columns
    # reordered to (wi major, hi minor) to match xt's row ordering
    psi4 = jnp.transpose(psi_dense.reshape(K, H_out, H_in, W_in), (0, 1, 3, 2))
    psi_p = jnp.zeros((K, Hp, M), jnp.float32).at[:, :H_out, :].set(
        psi4.reshape(K, H_out, M))
    psi_mat = psi_p.reshape(K * Hp, M).astype(jnp.bfloat16)

    # compact channel/kernel weights: group-block-diagonal over channels, expanded only
    # over the batch (B-block-diag); for B == 1 this is exactly wf (K, Cin, Cout_p).
    w4 = weight.reshape(groups, Og, Cg, K)
    wf = jnp.zeros((K, C_in, C_out_p), jnp.float32)
    for g in range(groups):
        wf = wf.at[:, g * Cg:(g + 1) * Cg, g * Og:(g + 1) * Og].set(
            jnp.transpose(w4[g], (2, 1, 0)))
    eye_b = jnp.eye(B, dtype=jnp.float32)
    wbk = jnp.einsum('pq,kco->kpcqo', eye_b, wf).reshape(K, B * C_in, B * C_out_p)

    bias_p = jnp.zeros((C_out_p,), jnp.float32).at[:C_out].set(bias.astype(jnp.float32))
    bias_row = jnp.tile(bias_p, (P_TILE * B,)).reshape(1, JW)

    # --- Pallas kernel --------------------------------------------------------
    kernel = functools.partial(_disco_kernel, K=K, Hp=Hp, T_INNER=T_INNER, P_TILE=P_TILE)

    def x_map(i):
        return lambda t, r: (t * T_INNER + i + r, 0)

    in_specs = [pl.BlockSpec((K * Hp, CH), lambda t, r: (0, r))]                 # psi chunk
    in_specs += [pl.BlockSpec((CH, P_TILE * BC), x_map(i)) for i in range(T_INNER)]
    in_specs += [
        # constant index maps -> DMA'd once; small now that the block-diagonal expansion
        # is over B only (independent of P_TILE)
        pl.BlockSpec((K, B * C_in, B * C_out_p), lambda t, r: (0, 0, 0)),
        pl.BlockSpec((1, JW), lambda t, r: (0, 0)),
    ]

    out_k = pl.pallas_call(
        kernel,
        out_shape=jax.ShapeDtypeStruct((num_outer * T_INNER, Hp, JW), jnp.float32),
        grid=(num_outer, num_chunks),
        in_specs=in_specs,
        out_specs=pl.BlockSpec((T_INNER, Hp, JW), lambda t, r: (t, 0, 0)),
        scratch_shapes=[pltpu.VMEM((T_INNER, K * Hp, P_TILE * BC), jnp.float32)],
        compiler_params=pltpu.CompilerParams(
            dimension_semantics=("parallel", "arbitrary"),
            vmem_limit_bytes=min(vmem_cap * 3 // 4, 100 * 1024 * 1024)),
    )(psi_mat, *([x3d] * T_INNER), wbk, bias_row)

    # (tile, ho, j, b, o) -> (b, o, ho, tile, j) -> NCHW (B, Cout, Hout, Wout)
    out5 = out_k.reshape(num_tiles, Hp, P_TILE, B, C_out_p)[:, :H_out, :, :, :C_out]
    out = jnp.transpose(out5, (3, 4, 1, 0, 2)).reshape(B, C_out, H_out, W_out)
    return out, x


def reference(x, psi_dense, quad_w, weight, bias, nlon_out, groups):
    """Pure-JAX port of torch_harmonics' _disco_s2_contraction_torch + einsum."""
    B, C, Hi, Wi = x.shape
    K, Ho, _ = psi_dense.shape
    ps = Wi // nlon_out
    xq = quad_w.reshape(1, 1, Hi, 1) * x
    ys = []
    for po in range(nlon_out):
        xr = jnp.roll(xq, -po * ps, axis=-1).reshape(B, C, Hi * Wi)
        ys.append(jnp.einsum('khm,bcm->bckh', psi_dense, xr,
                             precision=jax.lax.Precision.HIGHEST))
    y = jnp.stack(ys, axis=-1)                              # (B, C, K, Ho, Wo)
    Cg = C // groups
    y = y.reshape(B, groups, Cg, K, Ho, nlon_out)
    w4 = weight.reshape(groups, -1, Cg, K)
    out = jnp.einsum('bgckxy,gock->bgoxy', y, w4,
                     precision=jax.lax.Precision.HIGHEST).reshape(B, -1, Ho, nlon_out)
    return out + bias.reshape(1, -1, 1, 1)


if __name__ == "__main__":
    B, C_in, C_out, groups = 4, 8, 8, 2
    H_in, W_in, H_out, W_out, K = 16, 32, 8, 16, 3

    key = jax.random.PRNGKey(0)
    k1, k2, k3, k4 = jax.random.split(key, 4)
    x = jax.random.normal(k1, (B, C_in, H_in, W_in), jnp.float32)

    # TODO(synk): real psi comes from th._precompute_convolution_tensor_s2 (sparse
    # geometric filter basis); a deterministic dense stand-in is used here.  A production
    # kernel should additionally exploit its sparsity (scalar-prefetched per-tile chunk
    # tables) on top of this structure.
    psi_dense = jax.random.normal(k2, (K, H_out, H_in * W_in), jnp.float32)
    psi_dense = psi_dense / jnp.sqrt(jnp.float32(H_in * W_in))
    weight = jax.random.normal(k3, (C_out, C_in // groups, K), jnp.float32) * 0.3
    bias = jax.random.normal(k4, (C_out,), jnp.float32) * 0.1

    # equiangular-style quadrature weights, shape (H_in,)
    theta = (jnp.arange(H_in, dtype=jnp.float32) + 0.5) * (jnp.pi / H_in)
    quad_w = 2.0 * jnp.pi * jnp.sin(theta) * (jnp.pi / H_in) / W_in

    # The kernel's spatial contraction is bf16 x bf16 with f32 accumulation, so compare
    # against an f32 reference fed the SAME bf16-rounded psi / quad-pre-scaled x (the quad
    # factor is folded into x, hence quad=1 below).
    xq_r = (x * quad_w.reshape(1, 1, H_in, 1)).astype(jnp.bfloat16).astype(jnp.float32)
    psi_r = psi_dense.astype(jnp.bfloat16).astype(jnp.float32)
    ref = reference(xq_r, psi_r, jnp.ones_like(quad_w), weight, bias, W_out, groups)

    # 1) auto tiling (targets >=256-lane matmuls, psi reuse, >=2 parallel outer tiles)
    out_a, x_ret = disco_conv_s2(x, psi_dense, quad_w, weight, bias,
                                 nlon_out=W_out, groups=groups)
    # 2) explicit tiling exercising the T_INNER inner-tile psi-reuse path
    out_b, _ = disco_conv_s2(x, psi_dense, quad_w, weight, bias,
                             nlon_out=W_out, groups=groups, p_tile=4, t_inner=2)
    out_a = jax.block_until_ready(out_a)
    out_b = jax.block_until_ready(out_b)

    assert out_a.shape == (B, C_out, H_out, W_out)
    np.testing.assert_allclose(np.asarray(out_a), np.asarray(ref), rtol=2e-2, atol=2e-3)
    np.testing.assert_allclose(np.asarray(out_b), np.asarray(ref), rtol=2e-2, atol=2e-3)
    assert np.array_equal(np.asarray(x_ret), np.asarray(x))
    print("KERNEL_OK")
</pallas_src>

<mosaic_0001>
module attributes {stable_mosaic.version = 11 : i64} {
  func.func @_disco_kernel(%arg0: i32, %arg1: i32, %arg2: memref<24x256xbf16, #tpu.memory_space<vmem>>, %arg3: memref<256x256xbf16, #tpu.memory_space<vmem>>, %arg4: memref<3x32x32xf32, #tpu.memory_space<vmem>>, %arg5: memref<1x256xf32, #tpu.memory_space<vmem>>, %arg6: memref<1x8x256xf32, #tpu.memory_space<vmem>>, %arg7: memref<1x24x256xf32, #tpu.memory_space<vmem>>) attributes {dimension_semantics = [#tpu.dimension_semantics<parallel>, #tpu.dimension_semantics<arbitrary>], iteration_bounds = array<i64: 2, 2>, scalar_prefetch = 0 : i64, scratch_operands = 1 : i64, tpu.core_type = #tpu.core_type<tc>, window_params = [{transform_indices = @transform_0, window_bounds = array<i64: 24, 256>}, {transform_indices = @transform_1, window_bounds = array<i64: 256, 256>}, {pipeline_mode = #tpu.pipeline_mode<synchronous>, transform_indices = @transform_2, window_bounds = array<i64: 3, 32, 32>}, {pipeline_mode = #tpu.pipeline_mode<synchronous>, transform_indices = @transform_3, window_bounds = array<i64: 1, 256>}, {transform_indices = @transform_4, window_bounds = array<i64: 1, 8, 256>}]} {
    %c0_i32 = arith.constant 0 : i32
    %0 = arith.cmpi eq, %arg1, %c0_i32 : i32
    %1 = arith.extui %0 : i1 to i32
    %c0_i32_0 = arith.constant 0 : i32
    %2 = arith.cmpi ne, %1, %c0_i32_0 : i32
    scf.if %2 {
      %cst_11 = arith.constant 0.000000e+00 : f32
      %15 = vector.broadcast %cst_11 : f32 to vector<1x24x256xf32>
      %c0_12 = arith.constant 0 : index
      %c0_13 = arith.constant 0 : index
      %c0_14 = arith.constant 0 : index
      %16 = vector.load %arg7[%c0_12, %c0_13, %c0_14] : memref<1x24x256xf32, #tpu.memory_space<vmem>>, vector<1x24x256xf32>
      tpu.vector_store %arg7[%c0_12, %c0_13, %c0_14], %15 {strides = array<i32>} : memref<1x24x256xf32, #tpu.memory_space<vmem>>, vector<1x24x256xf32>,
    } else {
    }
    %c0 = arith.constant 0 : index
    %c0_1 = arith.constant 0 : index
    %3 = vector.load %arg2[%c0, %c0_1] : memref<24x256xbf16, #tpu.memory_space<vmem>>, vector<24x256xbf16>
    %c0_2 = arith.constant 0 : index
    %c0_3 = arith.constant 0 : index
    %c0_4 = arith.constant 0 : index
    %4 = vector.load %arg7[%c0_2, %c0_3, %c0_4] : memref<1x24x256xf32, #tpu.memory_space<vmem>>, vector<1x24x256xf32>
    %5 = vector.shape_cast %4 : vector<1x24x256xf32> to vector<24x256xf32>
    %c0_5 = arith.constant 0 : index
    %c0_6 = arith.constant 0 : index
    %6 = vector.load %arg3[%c0_5, %c0_6] : memref<256x256xbf16, #tpu.memory_space<vmem>>, vector<256x256xbf16>
    %cst = arith.constant dense<0.000000e+00> : vector<24x256xf32>
    %7 = tpu.matmul %3, %6, %cst {dimension_numbers = #tpu.dot_dimension_numbers<[1], [0], [0], [1], [0, 0, 1, 1], [], []>} : vector<24x256xbf16>, vector<256x256xbf16>, vector<24x256xf32> -> vector<24x256xf32>
    %8 = arith.addf %5, %7 : vector<24x256xf32>
    %c0_7 = arith.constant 0 : index
    %c0_8 = arith.constant 0 : index
    %c0_9 = arith.constant 0 : index
    %9 = vector.load %arg7[%c0_7, %c0_8, %c0_9] : memref<1x24x256xf32, #tpu.memory_space<vmem>>, vector<1x24x256xf32>
    %10 = vector.shape_cast %9 : vector<1x24x256xf32> to vector<24x256xf32>
    %11 = vector.shape_cast %8 : vector<24x256xf32> to vector<1x24x256xf32>
    tpu.vector_store %arg7[%c0_7, %c0_8, %c0_9], %11 {strides = array<i32>} : memref<1x24x256xf32, #tpu.memory_space<vmem>>, vector<1x24x256xf32>,
    %c1_i32 = arith.constant 1 : i32
    %12 = arith.cmpi eq, %arg1, %c1_i32 : i32
    %13 = arith.extui %12 : i1 to i32
    %c0_i32_10 = arith.constant 0 : i32
    %14 = arith.cmpi ne, %13, %c0_i32_10 : i32
    scf.if %14 {
      %cst_11 = arith.constant 0.000000e+00 : f32
      %15 = vector.broadcast %cst_11 : f32 to vector<8x256xf32>
      %c0_12 = arith.constant 0 : index
      %c0_13 = arith.constant 0 : index
      %16 = vector.load %arg5[%c0_12, %c0_13] : memref<1x256xf32, #tpu.memory_space<vmem>>, vector<1x256xf32>
      %17 = vector.broadcast %16 : vector<1x256xf32> to vector<8x256xf32>
      %18 = arith.addf %15, %17 : vector<8x256xf32>
      %c0_14 = arith.constant 0 : index
      %c0_15 = arith.constant 0 : index
      %c0_16 = arith.constant 0 : index
      %19 = vector.load %arg6[%c0_14, %c0_15, %c0_16] : memref<1x8x256xf32, #tpu.memory_space<vmem>>, vector<1x8x256xf32>
      %20 = vector.shape_cast %19 : vector<1x8x256xf32> to vector<8x256xf32>
      %21 = vector.shape_cast %18 : vector<8x256xf32> to vector<1x8x256xf32>
      tpu.vector_store %arg6[%c0_14, %c0_15, %c0_16], %21 {strides = array<i32>} : memref<1x8x256xf32, #tpu.memory_space<vmem>>, vector<1x8x256xf32>,
      %c0_17 = arith.constant 0 : index
      %c0_18 = arith.constant 0 : index
      %c0_19 = arith.constant 0 : index
      %22 = vector.load %arg6[%c0_17, %c0_18, %c0_19] : memref<1x8x256xf32, #tpu.memory_space<vmem>>, vector<1x8x32xf32>
      %23 = vector.shape_cast %22 : vector<1x8x32xf32> to vector<8x32xf32>
      %c0_20 = arith.constant 0 : index
      %c0_21 = arith.constant 0 : index
      %c0_22 = arith.constant 0 : index
      %24 = vector.load %arg7[%c0_20, %c0_21, %c0_22] : memref<1x24x256xf32, #tpu.memory_space<vmem>>, vector<1x8x32xf32>
      %25 = vector.shape_cast %24 : vector<1x8x32xf32> to vector<8x32xf32>
      %c0_23 = arith.constant 0 : index
      %c0_24 = arith.constant 0 : index
      %c0_25 = arith.constant 0 : index
      %26 = vector.load %arg4[%c0_23, %c0_24, %c0_25] : memref<3x32x32xf32, #tpu.memory_space<vmem>>, vector<1x32x32xf32>
      %27 = vector.shape_cast %26 : vector<1x32x32xf32> to vector<32x32xf32>
      %cst_26 = arith.constant dense<0.000000e+00> : vector<8x32xf32>
      %28 = tpu.matmul %25, %27, %cst_26 {dimension_numbers = #tpu.dot_dimension_numbers<[1], [0], [0], [1], [0, 0, 1, 1], [], []>} : vector<8x32xf32>, vector<32x32xf32>, vector<8x32xf32> -> vector<8x32xf32>
      %29 = arith.addf %23, %28 : vector<8x32xf32>
      %c0_27 = arith.constant 0 : index
      %c0_28 = arith.constant 0 : index
      %c0_29 = arith.constant 0 : index
      %30 = vector.load %arg6[%c0_27, %c0_28, %c0_29] : memref<1x8x256xf32, #tpu.memory_space<vmem>>, vector<1x8x32xf32>
      %31 = vector.shape_cast %30 : vector<1x8x32xf32> to vector<8x32xf32>
      %32 = vector.shape_cast %29 : vector<8x32xf32> to vector<1x8x32xf32>
      tpu.vector_store %arg6[%c0_27, %c0_28, %c0_29], %32 {strides = array<i32>} : memref<1x8x256xf32, #tpu.memory_space<vmem>>, vector<1x8x32xf32>,
      %c0_30 = arith.constant 0 : index
      %c0_31 = arith.constant 0 : index
      %c0_32 = arith.constant 0 : index
      %33 = vector.load %arg6[%c0_30, %c0_31, %c0_32] : memref<1x8x256xf32, #tpu.memory_space<vmem>>, vector<1x8x32xf32>
      %34 = vector.shape_cast %33 : vector<1x8x32xf32> to vector<8x32xf32>
      %c0_33 = arith.constant 0 : index
      %c8 = arith.constant 8 : index
      %c0_34 = arith.constant 0 : index
      %35 = vector.load %arg7[%c0_33, %c8, %c0_34] : memref<1x24x256xf32, #tpu.memory_space<vmem>>, vector<1x8x32xf32>
      %36 = vector.shape_cast %35 : vector<1x8x32xf32> to vector<8x32xf32>
      %c1 = arith.constant 1 : index
      %c0_35 = arith.constant 0 : index
      %c0_36 = arith.constant 0 : index
      %37 = vector.load %arg4[%c1, %c0_35, %c0_36] : memref<3x32x32xf32, #tpu.memory_space<vmem>>, vector<1x32x32xf32>
      %38 = vector.shape_cast %37 : vector<1x32x32xf32> to vector<32x32xf32>
      %cst_37 = arith.constant dense<0.000000e+00> : vector<8x32xf32>
      %39 = tpu.matmul %36, %38, %cst_37 {dimension_numbers = #tpu.dot_dimension_numbers<[1], [0], [0], [1], [0, 0, 1, 1], [], []>} : vector<8x32xf32>, vector<32x32xf32>, vector<8x32xf32> -> vector<8x32xf32>
      %40 = arith.addf %34, %39 : vector<8x32xf32>
      %c0_38 = arith.constant 0 : index
      %c0_39 = arith.constant 0 : index
      %c0_40 = arith.constant 0 : index
      %41 = vector.load %arg6[%c0_38, %c0_39, %c0_40] : memref<1x8x256xf32, #tpu.memory_space<vmem>>, vector<1x8x32xf32>
      %42 = vector.shape_cast %41 : vector<1x8x32xf32> to vector<8x32xf32>
      %43 = vector.shape_cast %40 : vector<8x32xf32> to vector<1x8x32xf32>
      tpu.vector_store %arg6[%c0_38, %c0_39, %c0_40], %43 {strides = array<i32>} : memref<1x8x256xf32, #tpu.memory_space<vmem>>, vector<1x8x32xf32>,
      %c0_41 = arith.constant 0 : index
      %c0_42 = arith.constant 0 : index
      %c0_43 = arith.constant 0 : index
      %44 = vector.load %arg6[%c0_41, %c0_42, %c0_43] : memref<1x8x256xf32, #tpu.memory_space<vmem>>, vector<1x8x32xf32>
      %45 = vector.shape_cast %44 : vector<1x8x32xf32> to vector<8x32xf32>
      %c0_44 = arith.constant 0 : index
      %c16 = arith.constant 16 : index
      %c0_45 = arith.constant 0 : index
      %46 = vector.load %arg7[%c0_44, %c16, %c0_45] : memref<1x24x256xf32, #tpu.memory_space<vmem>>, vector<1x8x32xf32>
      %47 = vector.shape_cast %46 : vector<1x8x32xf32> to vector<8x32xf32>
      %c2 = arith.constant 2 : index
      %c0_46 = arith.constant 0 : index
      %c0_47 = arith.constant 0 : index
      %48 = vector.load %arg4[%c2, %c0_46, %c0_47] : memref<3x32x32xf32, #tpu.memory_space<vmem>>, vector<1x32x32xf32>
      %49 = vector.shape_cast %48 : vector<1x32x32xf32> to vector<32x32xf32>
      %cst_48 = arith.constant dense<0.000000e+00> : vector<8x32xf32>
      %50 = tpu.matmul %47, %49, %cst_48 {dimension_numbers = #tpu.dot_dimension_numbers<[1], [0], [0], [1], [0, 0, 1, 1], [], []>} : vector<8x32xf32>, vector<32x32xf32>, vector<8x32xf32> -> vector<8x32xf32>
      %51 = arith.addf %45, %50 : vector<8x32xf32>
      %c0_49 = arith.constant 0 : index
      %c0_50 = arith.constant 0 : index
      %c0_51 = arith.constant 0 : index
      %52 = vector.load %arg6[%c0_49, %c0_50, %c0_51] : memref<1x8x256xf32, #tpu.memory_space<vmem>>, vector<1x8x32xf32>
      %53 = vector.shape_cast %52 : vector<1x8x32xf32> to vector<8x32xf32>
      %54 = vector.shape_cast %51 : vector<8x32xf32> to vector<1x8x32xf32>
      tpu.vector_store %arg6[%c0_49, %c0_50, %c0_51], %54 {strides = array<i32>} : memref<1x8x256xf32, #tpu.memory_space<vmem>>, vector<1x8x32xf32>,
      %c0_52 = arith.constant 0 : index
      %c0_53 = arith.constant 0 : index
      %c32 = arith.constant 32 : index
      %55 = vector.load %arg6[%c0_52, %c0_53, %c32] : memref<1x8x256xf32, #tpu.memory_space<vmem>>, vector<1x8x32xf32>
      %56 = vector.shape_cast %55 : vector<1x8x32xf32> to vector<8x32xf32>
      %c0_54 = arith.constant 0 : index
      %c0_55 = arith.constant 0 : index
      %c32_56 = arith.constant 32 : index
      %57 = vector.load %arg7[%c0_54, %c0_55, %c32_56] : memref<1x24x256xf32, #tpu.memory_space<vmem>>, vector<1x8x32xf32>
      %58 = vector.shape_cast %57 : vector<1x8x32xf32> to vector<8x32xf32>
      %c0_57 = arith.constant 0 : index
      %c0_58 = arith.constant 0 : index
      %c0_59 = arith.constant 0 : index
      %59 = vector.load %arg4[%c0_57, %c0_58, %c0_59] : memref<3x32x32xf32, #tpu.memory_space<vmem>>, vector<1x32x32xf32>
      %60 = vector.shape_cast %59 : vector<1x32x32xf32> to vector<32x32xf32>
      %cst_60 = arith.constant dense<0.000000e+00> : vector<8x32xf32>
      %61 = tpu.matmul %58, %60, %cst_60 {dimension_numbers = #tpu.dot_dimension_numbers<[1], [0], [0], [1], [0, 0, 1, 1], [], []>} : vector<8x32xf32>, vector<32x32xf32>, vector<8x32xf32> -> vector<8x32xf32>
      %62 = arith.addf %56, %61 : vector<8x32xf32>
      %c0_61 = arith.constant 0 : index
      %c0_62 = arith.constant 0 : index
      %c32_63 = arith.constant 32 : index
      %63 = vector.load %arg6[%c0_61, %c0_62, %c32_63] : memref<1x8x256xf32, #tpu.memory_space<vmem>>, vector<1x8x32xf32>
      %64 = vector.shape_cast %63 : vector<1x8x32xf32> to vector<8x32xf32>
      %65 = vector.shape_cast %62 : vector<8x32xf32> to vector<1x8x32xf32>
      tpu.vector_store %arg6[%c0_61, %c0_62, %c32_63], %65 {strides = array<i32>} : memref<1x8x256xf32, #tpu.memory_space<vmem>>, vector<1x8x32xf32>,
      %c0_64 = arith.constant 0 : index
      %c0_65 = arith.constant 0 : index
      %c32_66 = arith.constant 32 : index
      %66 = vector.load %arg6[%c0_64, %c0_65, %c32_66] : memref<1x8x256xf32, #tpu.memory_space<vmem>>, vector<1x8x32xf32>
      %67 = vector.shape_cast %66 : vector<1x8x32xf32> to vector<8x32xf32>
      %c0_67 = arith.constant 0 : index
      %c8_68 = arith.constant 8 : index
      %c32_69 = arith.constant 32 : index
      %68 = vector.load %arg7[%c0_67, %c8_68, %c32_69] : memref<1x24x256xf32, #tpu.memory_space<vmem>>, vector<1x8x32xf32>
      %69 = vector.shape_cast %68 : vector<1x8x32xf32> to vector<8x32xf32>
      %c1_70 = arith.constant 1 : index
      %c0_71 = arith.constant 0 : index
      %c0_72 = arith.constant 0 : index
      %70 = vector.load %arg4[%c1_70, %c0_71, %c0_72] : memref<3x32x32xf32, #tpu.memory_space<vmem>>, vector<1x32x32xf32>
      %71 = vector.shape_cast %70 : vector<1x32x32xf32> to vector<32x32xf32>
      %cst_73 = arith.constant dense<0.000000e+00> : vector<8x32xf32>
      %72 = tpu.matmul %69, %71, %cst_73 {dimension_numbers = #tpu.dot_dimension_numbers<[1], [0], [0], [1], [0, 0, 1, 1], [], []>} : vector<8x32xf32>, vector<32x32xf32>, vector<8x32xf32> -> vector<8x32xf32>
      %73 = arith.addf %67, %72 : vector<8x32xf32>
      %c0_74 = arith.constant 0 : index
      %c0_75 = arith.constant 0 : index
      %c32_76 = arith.constant 32 : index
      %74 = vector.load %arg6[%c0_74, %c0_75, %c32_76] : memref<1x8x256xf32, #tpu.memory_space<vmem>>, vector<1x8x32xf32>
      %75 = vector.shape_cast %74 : vector<1x8x32xf32> to vector<8x32xf32>
      %76 = vector.shape_cast %73 : vector<8x32xf32> to vector<1x8x32xf32>
      tpu.vector_store %arg6[%c0_74, %c0_75, %c32_76], %76 {strides = array<i32>} : memref<1x8x256xf32, #tpu.memory_space<vmem>>, vector<1x8x32xf32>,
      %c0_77 = arith.constant 0 : index
      %c0_78 = arith.constant 0 : index
      %c32_79 = arith.constant 32 : index
      %77 = vector.load %arg6[%c0_77, %c0_78, %c32_79] : memref<1x8x256xf32, #tpu.memory_space<vmem>>, vector<1x8x32xf32>
      %78 = vector.shape_cast %77 : vector<1x8x32xf32> to vector<8x32xf32>
      %c0_80 = arith.constant 0 : index
      %c16_81 = arith.constant 16 : index
      %c32_82 = arith.constant 32 : index
      %79 = vector.load %arg7[%c0_80, %c16_81, %c32_82] : memref<1x24x256xf32, #tpu.memory_space<vmem>>, vector<1x8x32xf32>
      %80 = vector.shape_cast %79 : vector<1x8x32xf32> to vector<8x32xf32>
      %c2_83 = arith.constant 2 : index
      %c0_84 = arith.constant 0 : index
      %c0_85 = arith.constant 0 : index
      %81 = vector.load %arg4[%c2_83, %c0_84, %c0_85] : memref<3x32x32xf32, #tpu.memory_space<vmem>>, vector<1x32x32xf32>
      %82 = vector.shape_cast %81 : vector<1x32x32xf32> to vector<32x32xf32>
      %cst_86 = arith.constant dense<0.000000e+00> : vector<8x32xf32>
      %83 = tpu.matmul %80, %82, %cst_86 {dimension_numbers = #tpu.dot_dimension_numbers<[1], [0], [0], [1], [0, 0, 1, 1], [], []>} : vector<8x32xf32>, vector<32x32xf32>, vector<8x32xf32> -> vector<8x32xf32>
      %84 = arith.addf %78, %83 : vector<8x32xf32>
      %c0_87 = arith.constant 0 : index
      %c0_88 = arith.constant 0 : index
      %c32_89 = arith.constant 32 : index
      %85 = vector.load %arg6[%c0_87, %c0_88, %c32_89] : memref<1x8x256xf32, #tpu.memory_space<vmem>>, vector<1x8x32xf32>
      %86 = vector.shape_cast %85 : vector<1x8x32xf32> to vector<8x32xf32>
      %87 = vector.shape_cast %84 : vector<8x32xf32> to vector<1x8x32xf32>
      tpu.vector_store %arg6[%c0_87, %c0_88, %c32_89], %87 {strides = array<i32>} : memref<1x8x256xf32, #tpu.memory_space<vmem>>, vector<1x8x32xf32>,
      %c0_90 = arith.constant 0 : index
      %c0_91 = arith.constant 0 : index
      %c64 = arith.constant 64 : index
      %88 = vector.load %arg6[%c0_90, %c0_91, %c64] : memref<1x8x256xf32, #tpu.memory_space<vmem>>, vector<1x8x32xf32>
      %89 = vector.shape_cast %88 : vector<1x8x32xf32> to vector<8x32xf32>
      %c0_92 = arith.constant 0 : index
      %c0_93 = arith.constant 0 : index
      %c64_94 = arith.constant 64 : index
      %90 = vector.load %arg7[%c0_92, %c0_93, %c64_94] : memref<1x24x256xf32, #tpu.memory_space<vmem>>, vector<1x8x32xf32>
      %91 = vector.shape_cast %90 : vector<1x8x32xf32> to vector<8x32xf32>
      %c0_95 = arith.constant 0 : index
      %c0_96 = arith.constant 0 : index
      %c0_97 = arith.constant 0 : index
      %92 = vector.load %arg4[%c0_95, %c0_96, %c0_97] : memref<3x32x32xf32, #tpu.memory_space<vmem>>, vector<1x32x32xf32>
      %93 = vector.shape_cast %92 : vector<1x32x32xf32> to vector<32x32xf32>
      %cst_98 = arith.constant dense<0.000000e+00> : vector<8x32xf32>
      %94 = tpu.matmul %91, %93, %cst_98 {dimension_numbers = #tpu.dot_dimension_numbers<[1], [0], [0], [1], [0, 0, 1, 1], [], []>} : vector<8x32xf32>, vector<32x32xf32>, vector<8x32xf32> -> vector<8x32xf32>
      %95 = arith.addf %89, %94 : vector<8x32xf32>
      %c0_99 = arith.constant 0 : index
      %c0_100 = arith.constant 0 : index
      %c64_101 = arith.constant 64 : index
      %96 = vector.load %arg6[%c0_99, %c0_100, %c64_101] : memref<1x8x256xf32, #tpu.memory_space<vmem>>, vector<1x8x32xf32>
      %97 = vector.shape_cast %96 : vector<1x8x32xf32> to vector<8x32xf32>
      %98 = vector.shape_cast %95 : vector<8x32xf32> to vector<1x8x32xf32>
      tpu.vector_store %arg6[%c0_99, %c0_100, %c64_101], %98 {strides = array<i32>} : memref<1x8x256xf32, #tpu.memory_space<vmem>>, vector<1x8x32xf32>,
      %c0_102 = arith.constant 0 : index
      %c0_103 = arith.constant 0 : index
      %c64_104 = arith.constant 64 : index
      %99 = vector.load %arg6[%c0_102, %c0_103, %c64_104] : memref<1x8x256xf32, #tpu.memory_space<vmem>>, vector<1x8x32xf32>
      %100 = vector.shape_cast %99 : vector<1x8x32xf32> to vector<8x32xf32>
      %c0_105 = arith.constant 0 : index
      %c8_106 = arith.constant 8 : index
      %c64_107 = arith.constant 64 : index
      %101 = vector.load %arg7[%c0_105, %c8_106, %c64_107] : memref<1x24x256xf32, #tpu.memory_space<vmem>>, vector<1x8x32xf32>
      %102 = vector.shape_cast %101 : vector<1x8x32xf32> to vector<8x32xf32>
      %c1_108 = arith.constant 1 : index
      %c0_109 = arith.constant 0 : index
      %c0_110 = arith.constant 0 : index
      %103 = vector.load %arg4[%c1_108, %c0_109, %c0_110] : memref<3x32x32xf32, #tpu.memory_space<vmem>>, vector<1x32x32xf32>
      %104 = vector.shape_cast %103 : vector<1x32x32xf32> to vector<32x32xf32>
      %cst_111 = arith.constant dense<0.000000e+00> : vector<8x32xf32>
      %105 = tpu.matmul %102, %104, %cst_111 {dimension_numbers = #tpu.dot_dimension_numbers<[1], [0], [0], [1], [0, 0, 1, 1], [], []>} : vector<8x32xf32>, vector<32x32xf32>, vector<8x32xf32> -> vector<8x32xf32>
      %106 = arith.addf %100, %105 : vector<8x32xf32>
      %c0_112 = arith.constant 0 : index
      %c0_113 = arith.constant 0 : index
      %c64_114 = arith.constant 64 : index
      %107 = vector.load %arg6[%c0_112, %c0_113, %c64_114] : memref<1x8x256xf32, #tpu.memory_space<vmem>>, vector<1x8x32xf32>
      %108 = vector.shape_cast %107 : vector<1x8x32xf32> to vector<8x32xf32>
      %109 = vector.shape_cast %106 : vector<8x32xf32> to vector<1x8x32xf32>
      tpu.vector_store %arg6[%c0_112, %c0_113, %c64_114], %109 {strides = array<i32>} : memref<1x8x256xf32, #tpu.memory_space<vmem>>, vector<1x8x32xf32>,
      %c0_115 = arith.constant 0 : index
      %c0_116 = arith.constant 0 : index
      %c64_117 = arith.constant 64 : index
      %110 = vector.load %arg6[%c0_115, %c0_116, %c64_117] : memref<1x8x256xf32, #tpu.memory_space<vmem>>, vector<1x8x32xf32>
      %111 = vector.shape_cast %110 : vector<1x8x32xf32> to vector<8x32xf32>
      %c0_118 = arith.constant 0 : index
      %c16_119 = arith.constant 16 : index
      %c64_120 = arith.constant 64 : index
      %112 = vector.load %arg7[%c0_118, %c16_119, %c64_120] : memref<1x24x256xf32, #tpu.memory_space<vmem>>, vector<1x8x32xf32>
      %113 = vector.shape_cast %112 : vector<1x8x32xf32> to vector<8x32xf32>
      %c2_121 = arith.constant 2 : index
      %c0_122 = arith.constant 0 : index
      %c0_123 = arith.constant 0 : index
      %114 = vector.load %arg4[%c2_121, %c0_122, %c0_123] : memref<3x32x32xf32, #tpu.memory_space<vmem>>, vector<1x32x32xf32>
      %115 = vector.shape_cast %114 : vector<1x32x32xf32> to vector<32x32xf32>
      %cst_124 = arith.constant dense<0.000000e+00> : vector<8x32xf32>
      %116 = tpu.matmul %113, %115, %cst_124 {dimension_numbers = #tpu.dot_dimension_numbers<[1], [0], [0], [1], [0, 0, 1, 1], [], []>} : vector<8x32xf32>, vector<32x32xf32>, vector<8x32xf32> -> vector<8x32xf32>
      %117 = arith.addf %111, %116 : vector<8x32xf32>
      %c0_125 = arith.constant 0 : index
      %c0_126 = arith.constant 0 : index
      %c64_127 = arith.constant 64 : index
      %118 = vector.load %arg6[%c0_125, %c0_126, %c64_127] : memref<1x8x256xf32, #tpu.memory_space<vmem>>, vector<1x8x32xf32>
      %119 = vector.shape_cast %118 : vector<1x8x32xf32> to vector<8x32xf32>
      %120 = vector.shape_cast %117 : vector<8x32xf32> to vector<1x8x32xf32>
      tpu.vector_store %arg6[%c0_125, %c0_126, %c64_127], %120 {strides = array<i32>} : memref<1x8x256xf32, #tpu.memory_space<vmem>>, vector<1x8x32xf32>,
      %c0_128 = arith.constant 0 : index
      %c0_129 = arith.constant 0 : index
      %c96 = arith.constant 96 : index
      %121 = vector.load %arg6[%c0_128, %c0_129, %c96] : memref<1x8x256xf32, #tpu.memory_space<vmem>>, vector<1x8x32xf32>
      %122 = vector.shape_cast %121 : vector<1x8x32xf32> to vector<8x32xf32>
      %c0_130 = arith.constant 0 : index
      %c0_131 = arith.constant 0 : index
      %c96_132 = arith.constant 96 : index
      %123 = vector.load %arg7[%c0_130, %c0_131, %c96_132] : memref<1x24x256xf32, #tpu.memory_space<vmem>>, vector<1x8x32xf32>
      %124 = vector.shape_cast %123 : vector<1x8x32xf32> to vector<8x32xf32>
      %c0_133 = arith.constant 0 : index
      %c0_134 = arith.constant 0 : index
      %c0_135 = arith.constant 0 : index
      %125 = vector.load %arg4[%c0_133, %c0_134, %c0_135] : memref<3x32x32xf32, #tpu.memory_space<vmem>>, vector<1x32x32xf32>
      %126 = vector.shape_cast %125 : vector<1x32x32xf32> to vector<32x32xf32>
      %cst_136 = arith.constant dense<0.000000e+00> : vector<8x32xf32>
      %127 = tpu.matmul %124, %126, %cst_136 {dimension_numbers = #tpu.dot_dimension_numbers<[1], [0], [0], [1], [0, 0, 1, 1], [], []>} : vector<8x32xf32>, vector<32x32xf32>, vector<8x32xf32> -> vector<8x32xf32>
      %128 = arith.addf %122, %127 : vector<8x32xf32>
      %c0_137 = arith.constant 0 : index
      %c0_138 = arith.constant 0 : index
      %c96_139 = arith.constant 96 : index
      %129 = vector.load %arg6[%c0_137, %c0_138, %c96_139] : memref<1x8x256xf32, #tpu.memory_space<vmem>>, vector<1x8x32xf32>
      %130 = vector.shape_cast %129 : vector<1x8x32xf32> to vector<8x32xf32>
      %131 = vector.shape_cast %128 : vector<8x32xf32> to vector<1x8x32xf32>
      tpu.vector_store %arg6[%c0_137, %c0_138, %c96_139], %131 {strides = array<i32>} : memref<1x8x256xf32, #tpu.memory_space<vmem>>, vector<1x8x32xf32>,
      %c0_140 = arith.constant 0 : index
      %c0_141 = arith.constant 0 : index
      %c96_142 = arith.constant 96 : index
      %132 = vector.load %arg6[%c0_140, %c0_141, %c96_142] : memref<1x8x256xf32, #tpu.memory_space<vmem>>, vector<1x8x32xf32>
      %133 = vector.shape_cast %132 : vector<1x8x32xf32> to vector<8x32xf32>
      %c0_143 = arith.constant 0 : index
      %c8_144 = arith.constant 8 : index
      %c96_145 = arith.constant 96 : index
      %134 = vector.load %arg7[%c0_143, %c8_144, %c96_145] : memref<1x24x256xf32, #tpu.memory_space<vmem>>, vector<1x8x32xf32>
      %135 = vector.shape_cast %134 : vector<1x8x32xf32> to vector<8x32xf32>
      %c1_146 = arith.constant 1 : index
      %c0_147 = arith.constant 0 : index
      %c0_148 = arith.constant 0 : index
      %136 = vector.load %arg4[%c1_146, %c0_147, %c0_148] : memref<3x32x32xf32, #tpu.memory_space<vmem>>, vector<1x32x32xf32>
      %137 = vector.shape_cast %136 : vector<1x32x32xf32> to vector<32x32xf32>
      %cst_149 = arith.constant dense<0.000000e+00> : vector<8x32xf32>
      %138 = tpu.matmul %135, %137, %cst_149 {dimension_numbers = #tpu.dot_dimension_numbers<[1], [0], [0], [1], [0, 0, 1, 1], [], []>} : vector<8x32xf32>, vector<32x32xf32>, vector<8x32xf32> -> vector<8x32xf32>
      %139 = arith.addf %133, %138 : vector<8x32xf32>
      %c0_150 = arith.constant 0 : index
      %c0_151 = arith.constant 0 : index
      %c96_152 = arith.constant 96 : index
      %140 = vector.load %arg6[%c0_150, %c0_151, %c96_152] : memref<1x8x256xf32, #tpu.memory_space<vmem>>, vector<1x8x32xf32>
      %141 = vector.shape_cast %140 : vector<1x8x32xf32> to vector<8x32xf32>
      %142 = vector.shape_cast %139 : vector<8x32xf32> to vector<1x8x32xf32>
      tpu.vector_store %arg6[%c0_150, %c0_151, %c96_152], %142 {strides = array<i32>} : memref<1x8x256xf32, #tpu.memory_space<vmem>>, vector<1x8x32xf32>,
      %c0_153 = arith.constant 0 : index
      %c0_154 = arith.constant 0 : index
      %c96_155 = arith.constant 96 : index
      %143 = vector.load %arg6[%c0_153, %c0_154, %c96_155] : memref<1x8x256xf32, #tpu.memory_space<vmem>>, vector<1x8x32xf32>
      %144 = vector.shape_cast %143 : vector<1x8x32xf32> to vector<8x32xf32>
      %c0_156 = arith.constant 0 : index
      %c16_157 = arith.constant 16 : index
      %c96_158 = arith.constant 96 : index
      %145 = vector.load %arg7[%c0_156, %c16_157, %c96_158] : memref<1x24x256xf32, #tpu.memory_space<vmem>>, vector<1x8x32xf32>
      %146 = vector.shape_cast %145 : vector<1x8x32xf32> to vector<8x32xf32>
      %c2_159 = arith.constant 2 : index
      %c0_160 = arith.constant 0 : index
      %c0_161 = arith.constant 0 : index
      %147 = vector.load %arg4[%c2_159, %c0_160, %c0_161] : memref<3x32x32xf32, #tpu.memory_space<vmem>>, vector<1x32x32xf32>
      %148 = vector.shape_cast %147 : vector<1x32x32xf32> to vector<32x32xf32>
      %cst_162 = arith.constant dense<0.000000e+00> : vector<8x32xf32>
      %149 = tpu.matmul %146, %148, %cst_162 {dimension_numbers = #tpu.dot_dimension_numbers<[1], [0], [0], [1], [0, 0, 1, 1], [], []>} : vector<8x32xf32>, vector<32x32xf32>, vector<8x32xf32> -> vector<8x32xf32>
      %150 = arith.addf %144, %149 : vector<8x32xf32>
      %c0_163 = arith.constant 0 : index
      %c0_164 = arith.constant 0 : index
      %c96_165 = arith.constant 96 : index
      %151 = vector.load %arg6[%c0_163, %c0_164, %c96_165] : memref<1x8x256xf32, #tpu.memory_space<vmem>>, vector<1x8x32xf32>
      %152 = vector.shape_cast %151 : vector<1x8x32xf32> to vector<8x32xf32>
      %153 = vector.shape_cast %150 : vector<8x32xf32> to vector<1x8x32xf32>
      tpu.vector_store %arg6[%c0_163, %c0_164, %c96_165], %153 {strides = array<i32>} : memref<1x8x256xf32, #tpu.memory_space<vmem>>, vector<1x8x32xf32>,
      %c0_166 = arith.constant 0 : index
      %c0_167 = arith.constant 0 : index
      %c128 = arith.constant 128 : index
      %154 = vector.load %arg6[%c0_166, %c0_167, %c128] : memref<1x8x256xf32, #tpu.memory_space<vmem>>, vector<1x8x32xf32>
      %155 = vector.shape_cast %154 : vector<1x8x32xf32> to vector<8x32xf32>
      %c0_168 = arith.constant 0 : index
      %c0_169 = arith.constant 0 : index
      %c128_170 = arith.constant 128 : index
      %156 = vector.load %arg7[%c0_168, %c0_169, %c128_170] : memref<1x24x256xf32, #tpu.memory_space<vmem>>, vector<1x8x32xf32>
      %157 = vector.shape_cast %156 : vector<1x8x32xf32> to vector<8x32xf32>
      %c0_171 = arith.constant 0 : index
      %c0_172 = arith.constant 0 : index
      %c0_173 = arith.constant 0 : index
      %158 = vector.load %arg4[%c0_171, %c0_172, %c0_173] : memref<3x32x32xf32, #tpu.memory_space<vmem>>, vector<1x32x32xf32>
      %159 = vector.shape_cast %158 : vector<1x32x32xf32> to vector<32x32xf32>
      %cst_174 = arith.constant dense<0.000000e+00> : vector<8x32xf32>
      %160 = tpu.matmul %157, %159, %cst_174 {dimension_numbers = #tpu.dot_dimension_numbers<[1], [0], [0], [1], [0, 0, 1, 1], [], []>} : vector<8x32xf32>, vector<32x32xf32>, vector<8x32xf32> -> vector<8x32xf32>
      %161 = arith.addf %155, %160 : vector<8x32xf32>
      %c0_175 = arith.constant 0 : index
      %c0_176 = arith.constant 0 : index
      %c128_177 = arith.constant 128 : index
      %162 = vector.load %arg6[%c0_175, %c0_176, %c128_177] : memref<1x8x256xf32, #tpu.memory_space<vmem>>, vector<1x8x32xf32>
      %163 = vector.shape_cast %162 : vector<1x8x32xf32> to vector<8x32xf32>
      %164 = vector.shape_cast %161 : vector<8x32xf32> to vector<1x8x32xf32>
      tpu.vector_store %arg6[%c0_175, %c0_176, %c128_177], %164 {strides = array<i32>} : memref<1x8x256xf32, #tpu.memory_space<vmem>>, vector<1x8x32xf32>,
      %c0_178 = arith.constant 0 : index
      %c0_179 = arith.constant 0 : index
      %c128_180 = arith.constant 128 : index
      %165 = vector.load %arg6[%c0_178, %c0_179, %c128_180] : memref<1x8x256xf32, #tpu.memory_space<vmem>>, vector<1x8x32xf32>
      %166 = vector.shape_cast %165 : vector<1x8x32xf32> to vector<8x32xf32>
      %c0_181 = arith.constant 0 : index
      %c8_182 = arith.constant 8 : index
      %c128_183 = arith.constant 128 : index
      %167 = vector.load %arg7[%c0_181, %c8_182, %c128_183] : memref<1x24x256xf32, #tpu.memory_space<vmem>>, vector<1x8x32xf32>
      %168 = vector.shape_cast %167 : vector<1x8x32xf32> to vector<8x32xf32>
      %c1_184 = arith.constant 1 : index
      %c0_185 = arith.constant 0 : index
      %c0_186 = arith.constant 0 : index
      %169 = vector.load %arg4[%c1_184, %c0_185, %c0_186] : memref<3x32x32xf32, #tpu.memory_space<vmem>>, vector<1x32x32xf32>
      %170 = vector.shape_cast %169 : vector<1x32x32xf32> to vector<32x32xf32>
      %cst_187 = arith.constant dense<0.000000e+00> : vector<8x32xf32>
      %171 = tpu.matmul %168, %170, %cst_187 {dimension_numbers = #tpu.dot_dimension_numbers<[1], [0], [0], [1], [0, 0, 1, 1], [], []>} : vector<8x32xf32>, vector<32x32xf32>, vector<8x32xf32> -> vector<8x32xf32>
      %172 = arith.addf %166, %171 : vector<8x32xf32>
      %c0_188 = arith.constant 0 : index
      %c0_189 = arith.constant 0 : index
      %c128_190 = arith.constant 128 : index
      %173 = vector.load %arg6[%c0_188, %c0_189, %c128_190] : memref<1x8x256xf32, #tpu.memory_space<vmem>>, vector<1x8x32xf32>
      %174 = vector.shape_cast %173 : vector<1x8x32xf32> to vector<8x32xf32>
      %175 = vector.shape_cast %172 : vector<8x32xf32> to vector<1x8x32xf32>
      tpu.vector_store %arg6[%c0_188, %c0_189, %c128_190], %175 {strides = array<i32>} : memref<1x8x256xf32, #tpu.memory_space<vmem>>, vector<1x8x32xf32>,
      %c0_191 = arith.constant 0 : index
      %c0_192 = arith.constant 0 : index
      %c128_193 = arith.constant 128 : index
      %176 = vector.load %arg6[%c0_191, %c0_192, %c128_193] : memref<1x8x256xf32, #tpu.memory_space<vmem>>, vector<1x8x32xf32>
      %177 = vector.shape_cast %176 : vector<1x8x32xf32> to vector<8x32xf32>
      %c0_194 = arith.constant 0 : index
      %c16_195 = arith.constant 16 : index
      %c128_196 = arith.constant 128 : index
      %178 = vector.load %arg7[%c0_194, %c16_195, %c128_196] : memref<1x24x256xf32, #tpu.memory_space<vmem>>, vector<1x8x32xf32>
      %179 = vector.shape_cast %178 : vector<1x8x32xf32> to vector<8x32xf32>
      %c2_197 = arith.constant 2 : index
      %c0_198 = arith.constant 0 : index
      %c0_199 = arith.constant 0 : index
      %180 = vector.load %arg4[%c2_197, %c0_198, %c0_199] : memref<3x32x32xf32, #tpu.memory_space<vmem>>, vector<1x32x32xf32>
      %181 = vector.shape_cast %180 : vector<1x32x32xf32> to vector<32x32xf32>
      %cst_200 = arith.constant dense<0.000000e+00> : vector<8x32xf32>
      %182 = tpu.matmul %179, %181, %cst_200 {dimension_numbers = #tpu.dot_dimension_numbers<[1], [0], [0], [1], [0, 0, 1, 1], [], []>} : vector<8x32xf32>, vector<32x32xf32>, vector<8x32xf32> -> vector<8x32xf32>
      %183 = arith.addf %177, %182 : vector<8x32xf32>
      %c0_201 = arith.constant 0 : index
      %c0_202 = arith.constant 0 : index
      %c128_203 = arith.constant 128 : index
      %184 = vector.load %arg6[%c0_201, %c0_202, %c128_203] : memref<1x8x256xf32, #tpu.memory_space<vmem>>, vector<1x8x32xf32>
      %185 = vector.shape_cast %184 : vector<1x8x32xf32> to vector<8x32xf32>
      %186 = vector.shape_cast %183 : vector<8x32xf32> to vector<1x8x32xf32>
      tpu.vector_store %arg6[%c0_201, %c0_202, %c128_203], %186 {strides = array<i32>} : memref<1x8x256xf32, #tpu.memory_space<vmem>>, vector<1x8x32xf32>,
      %c0_204 = arith.constant 0 : index
      %c0_205 = arith.constant 0 : index
      %c160 = arith.constant 160 : index
      %187 = vector.load %arg6[%c0_204, %c0_205, %c160] : memref<1x8x256xf32, #tpu.memory_space<vmem>>, vector<1x8x32xf32>
      %188 = vector.shape_cast %187 : vector<1x8x32xf32> to vector<8x32xf32>
      %c0_206 = arith.constant 0 : index
      %c0_207 = arith.constant 0 : index
      %c160_208 = arith.constant 160 : index
      %189 = vector.load %arg7[%c0_206, %c0_207, %c160_208] : memref<1x24x256xf32, #tpu.memory_space<vmem>>, vector<1x8x32xf32>
      %190 = vector.shape_cast %189 : vector<1x8x32xf32> to vector<8x32xf32>
      %c0_209 = arith.constant 0 : index
      %c0_210 = arith.constant 0 : index
      %c0_211 = arith.constant 0 : index
      %191 = vector.load %arg4[%c0_209, %c0_210, %c0_211] : memref<3x32x32xf32, #tpu.memory_space<vmem>>, vector<1x32x32xf32>
      %192 = vector.shape_cast %191 : vector<1x32x32xf32> to vector<32x32xf32>
      %cst_212 = arith.constant dense<0.000000e+00> : vector<8x32xf32>
      %193 = tpu.matmul %190, %192, %cst_212 {dimension_numbers = #tpu.dot_dimension_numbers<[1], [0], [0], [1], [0, 0, 1, 1], [], []>} : vector<8x32xf32>, vector<32x32xf32>, vector<8x32xf32> -> vector<8x32xf32>
      %194 = arith.addf %188, %193 : vector<8x32xf32>
      %c0_213 = arith.constant 0 : index
      %c0_214 = arith.constant 0 : index
      %c160_215 = arith.constant 160 : index
      %195 = vector.load %arg6[%c0_213, %c0_214, %c160_215] : memref<1x8x256xf32, #tpu.memory_space<vmem>>, vector<1x8x32xf32>
      %196 = vector.shape_cast %195 : vector<1x8x32xf32> to vector<8x32xf32>
      %197 = vector.shape_cast %194 : vector<8x32xf32> to vector<1x8x32xf32>
      tpu.vector_store %arg6[%c0_213, %c0_214, %c160_215], %197 {strides = array<i32>} : memref<1x8x256xf32, #tpu.memory_space<vmem>>, vector<1x8x32xf32>,
      %c0_216 = arith.constant 0 : index
      %c0_217 = arith.constant 0 : index
      %c160_218 = arith.constant 160 : index
      %198 = vector.load %arg6[%c0_216, %c0_217, %c160_218] : memref<1x8x256xf32, #tpu.memory_space<vmem>>, vector<1x8x32xf32>
      %199 = vector.shape_cast %198 : vector<1x8x32xf32> to vector<8x32xf32>
      %c0_219 = arith.constant 0 : index
      %c8_220 = arith.constant 8 : index
      %c160_221 = arith.constant 160 : index
      %200 = vector.load %arg7[%c0_219, %c8_220, %c160_221] : memref<1x24x256xf32, #tpu.memory_space<vmem>>, vector<1x8x32xf32>
      %201 = vector.shape_cast %200 : vector<1x8x32xf32> to vector<8x32xf32>
      %c1_222 = arith.constant 1 : index
      %c0_223 = arith.constant 0 : index
      %c0_224 = arith.constant 0 : index
      %202 = vector.load %arg4[%c1_222, %c0_223, %c0_224] : memref<3x32x32xf32, #tpu.memory_space<vmem>>, vector<1x32x32xf32>
      %203 = vector.shape_cast %202 : vector<1x32x32xf32> to vector<32x32xf32>
      %cst_225 = arith.constant dense<0.000000e+00> : vector<8x32xf32>
      %204 = tpu.matmul %201, %203, %cst_225 {dimension_numbers = #tpu.dot_dimension_numbers<[1], [0], [0], [1], [0, 0, 1, 1], [], []>} : vector<8x32xf32>, vector<32x32xf32>, vector<8x32xf32> -> vector<8x32xf32>
      %205 = arith.addf %199, %204 : vector<8x32xf32>
      %c0_226 = arith.constant 0 : index
      %c0_227 = arith.constant 0 : index
      %c160_228 = arith.constant 160 : index
      %206 = vector.load %arg6[%c0_226, %c0_227, %c160_228] : memref<1x8x256xf32, #tpu.memory_space<vmem>>, vector<1x8x32xf32>
      %207 = vector.shape_cast %206 : vector<1x8x32xf32> to vector<8x32xf32>
      %208 = vector.shape_cast %205 : vector<8x32xf32> to vector<1x8x32xf32>
      tpu.vector_store %arg6[%c0_226, %c0_227, %c160_228], %208 {strides = array<i32>} : memref<1x8x256xf32, #tpu.memory_space<vmem>>, vector<1x8x32xf32>,
      %c0_229 = arith.constant 0 : index
      %c0_230 = arith.constant 0 : index
      %c160_231 = arith.constant 160 : index
      %209 = vector.load %arg6[%c0_229, %c0_230, %c160_231] : memref<1x8x256xf32, #tpu.memory_space<vmem>>, vector<1x8x32xf32>
      %210 = vector.shape_cast %209 : vector<1x8x32xf32> to vector<8x32xf32>
      %c0_232 = arith.constant 0 : index
      %c16_233 = arith.constant 16 : index
      %c160_234 = arith.constant 160 : index
      %211 = vector.load %arg7[%c0_232, %c16_233, %c160_234] : memref<1x24x256xf32, #tpu.memory_space<vmem>>, vector<1x8x32xf32>
      %212 = vector.shape_cast %211 : vector<1x8x32xf32> to vector<8x32xf32>
      %c2_235 = arith.constant 2 : index
      %c0_236 = arith.constant 0 : index
      %c0_237 = arith.constant 0 : index
      %213 = vector.load %arg4[%c2_235, %c0_236, %c0_237] : memref<3x32x32xf32, #tpu.memory_space<vmem>>, vector<1x32x32xf32>
      %214 = vector.shape_cast %213 : vector<1x32x32xf32> to vector<32x32xf32>
      %cst_238 = arith.constant dense<0.000000e+00> : vector<8x32xf32>
      %215 = tpu.matmul %212, %214, %cst_238 {dimension_numbers = #tpu.dot_dimension_numbers<[1], [0], [0], [1], [0, 0, 1, 1], [], []>} : vector<8x32xf32>, vector<32x32xf32>, vector<8x32xf32> -> vector<8x32xf32>
      %216 = arith.addf %210, %215 : vector<8x32xf32>
      %c0_239 = arith.constant 0 : index
      %c0_240 = arith.constant 0 : index
      %c160_241 = arith.constant 160 : index
      %217 = vector.load %arg6[%c0_239, %c0_240, %c160_241] : memref<1x8x256xf32, #tpu.memory_space<vmem>>, vector<1x8x32xf32>
      %218 = vector.shape_cast %217 : vector<1x8x32xf32> to vector<8x32xf32>
      %219 = vector.shape_cast %216 : vector<8x32xf32> to vector<1x8x32xf32>
      tpu.vector_store %arg6[%c0_239, %c0_240, %c160_241], %219 {strides = array<i32>} : memref<1x8x256xf32, #tpu.memory_space<vmem>>, vector<1x8x32xf32>,
      %c0_242 = arith.constant 0 : index
      %c0_243 = arith.constant 0 : index
      %c192 = arith.constant 192 : index
      %220 = vector.load %arg6[%c0_242, %c0_243, %c192] : memref<1x8x256xf32, #tpu.memory_space<vmem>>, vector<1x8x32xf32>
      %221 = vector.shape_cast %220 : vector<1x8x32xf32> to vector<8x32xf32>
      %c0_244 = arith.constant 0 : index
      %c0_245 = arith.constant 0 : index
      %c192_246 = arith.constant 192 : index
      %222 = vector.load %arg7[%c0_244, %c0_245, %c192_246] : memref<1x24x256xf32, #tpu.memory_space<vmem>>, vector<1x8x32xf32>
      %223 = vector.shape_cast %222 : vector<1x8x32xf32> to vector<8x32xf32>
      %c0_247 = arith.constant 0 : index
      %c0_248 = arith.constant 0 : index
      %c0_249 = arith.constant 0 : index
      %224 = vector.load %arg4[%c0_247, %c0_248, %c0_249] : memref<3x32x32xf32, #tpu.memory_space<vmem>>, vector<1x32x32xf32>
      %225 = vector.shape_cast %224 : vector<1x32x32xf32> to vector<32x32xf32>
      %cst_250 = arith.constant dense<0.000000e+00> : vector<8x32xf32>
      %226 = tpu.matmul %223, %225, %cst_250 {dimension_numbers = #tpu.dot_dimension_numbers<[1], [0], [0], [1], [0, 0, 1, 1], [], []>} : vector<8x32xf32>, vector<32x32xf32>, vector<8x32xf32> -> vector<8x32xf32>
      %227 = arith.addf %221, %226 : vector<8x32xf32>
      %c0_251 = arith.constant 0 : index
      %c0_252 = arith.constant 0 : index
      %c192_253 = arith.constant 192 : index
      %228 = vector.load %arg6[%c0_251, %c0_252, %c192_253] : memref<1x8x256xf32, #tpu.memory_space<vmem>>, vector<1x8x32xf32>
      %229 = vector.shape_cast %228 : vector<1x8x32xf32> to vector<8x32xf32>
      %230 = vector.shape_cast %227 : vector<8x32xf32> to vector<1x8x32xf32>
      tpu.vector_store %arg6[%c0_251, %c0_252, %c192_253], %230 {strides = array<i32>} : memref<1x8x256xf32, #tpu.memory_space<vmem>>, vector<1x8x32xf32>,
      %c0_254 = arith.constant 0 : index
      %c0_255 = arith.constant 0 : index
      %c192_256 = arith.constant 192 : index
      %231 = vector.load %arg6[%c0_254, %c0_255, %c192_256] : memref<1x8x256xf32, #tpu.memory_space<vmem>>, vector<1x8x32xf32>
      %232 = vector.shape_cast %231 : vector<1x8x32xf32> to vector<8x32xf32>
      %c0_257 = arith.constant 0 : index
      %c8_258 = arith.constant 8 : index
      %c192_259 = arith.constant 192 : index
      %233 = vector.load %arg7[%c0_257, %c8_258, %c192_259] : memref<1x24x256xf32, #tpu.memory_space<vmem>>, vector<1x8x32xf32>
      %234 = vector.shape_cast %233 : vector<1x8x32xf32> to vector<8x32xf32>
      %c1_260 = arith.constant 1 : index
      %c0_261 = arith.constant 0 : index
      %c0_262 = arith.constant 0 : index
      %235 = vector.load %arg4[%c1_260, %c0_261, %c0_262] : memref<3x32x32xf32, #tpu.memory_space<vmem>>, vector<1x32x32xf32>
      %236 = vector.shape_cast %235 : vector<1x32x32xf32> to vector<32x32xf32>
      %cst_263 = arith.constant dense<0.000000e+00> : vector<8x32xf32>
      %237 = tpu.matmul %234, %236, %cst_263 {dimension_numbers = #tpu.dot_dimension_numbers<[1], [0], [0], [1], [0, 0, 1, 1], [], []>} : vector<8x32xf32>, vector<32x32xf32>, vector<8x32xf32> -> vector<8x32xf32>
      %238 = arith.addf %232, %237 : vector<8x32xf32>
      %c0_264 = arith.constant 0 : index
      %c0_265 = arith.constant 0 : index
      %c192_266 = arith.constant 192 : index
      %239 = vector.load %arg6[%c0_264, %c0_265, %c192_266] : memref<1x8x256xf32, #tpu.memory_space<vmem>>, vector<1x8x32xf32>
      %240 = vector.shape_cast %239 : vector<1x8x32xf32> to vector<8x32xf32>
      %241 = vector.shape_cast %238 : vector<8x32xf32> to vector<1x8x32xf32>
      tpu.vector_store %arg6[%c0_264, %c0_265, %c192_266], %241 {strides = array<i32>} : memref<1x8x256xf32, #tpu.memory_space<vmem>>, vector<1x8x32xf32>,
      %c0_267 = arith.constant 0 : index
      %c0_268 = arith.constant 0 : index
      %c192_269 = arith.constant 192 : index
      %242 = vector.load %arg6[%c0_267, %c0_268, %c192_269] : memref<1x8x256xf32, #tpu.memory_space<vmem>>, vector<1x8x32xf32>
      %243 = vector.shape_cast %242 : vector<1x8x32xf32> to vector<8x32xf32>
      %c0_270 = arith.constant 0 : index
      %c16_271 = arith.constant 16 : index
      %c192_272 = arith.constant 192 : index
      %244 = vector.load %arg7[%c0_270, %c16_271, %c192_272] : memref<1x24x256xf32, #tpu.memory_space<vmem>>, vector<1x8x32xf32>
      %245 = vector.shape_cast %244 : vector<1x8x32xf32> to vector<8x32xf32>
      %c2_273 = arith.constant 2 : index
      %c0_274 = arith.constant 0 : index
      %c0_275 = arith.constant 0 : index
      %246 = vector.load %arg4[%c2_273, %c0_274, %c0_275] : memref<3x32x32xf32, #tpu.memory_space<vmem>>, vector<1x32x32xf32>
      %247 = vector.shape_cast %246 : vector<1x32x32xf32> to vector<32x32xf32>
      %cst_276 = arith.constant dense<0.000000e+00> : vector<8x32xf32>
      %248 = tpu.matmul %245, %247, %cst_276 {dimension_numbers = #tpu.dot_dimension_numbers<[1], [0], [0], [1], [0, 0, 1, 1], [], []>} : vector<8x32xf32>, vector<32x32xf32>, vector<8x32xf32> -> vector<8x32xf32>
      %249 = arith.addf %243, %248 : vector<8x32xf32>
      %c0_277 = arith.constant 0 : index
      %c0_278 = arith.constant 0 : index
      %c192_279 = arith.constant 192 : index
      %250 = vector.load %arg6[%c0_277, %c0_278, %c192_279] : memref<1x8x256xf32, #tpu.memory_space<vmem>>, vector<1x8x32xf32>
      %251 = vector.shape_cast %250 : vector<1x8x32xf32> to vector<8x32xf32>
      %252 = vector.shape_cast %249 : vector<8x32xf32> to vector<1x8x32xf32>
      tpu.vector_store %arg6[%c0_277, %c0_278, %c192_279], %252 {strides = array<i32>} : memref<1x8x256xf32, #tpu.memory_space<vmem>>, vector<1x8x32xf32>,
      %c0_280 = arith.constant 0 : index
      %c0_281 = arith.constant 0 : index
      %c224 = arith.constant 224 : index
      %253 = vector.load %arg6[%c0_280, %c0_281, %c224] : memref<1x8x256xf32, #tpu.memory_space<vmem>>, vector<1x8x32xf32>
      %254 = vector.shape_cast %253 : vector<1x8x32xf32> to vector<8x32xf32>
      %c0_282 = arith.constant 0 : index
      %c0_283 = arith.constant 0 : index
      %c224_284 = arith.constant 224 : index
      %255 = vector.load %arg7[%c0_282, %c0_283, %c224_284] : memref<1x24x256xf32, #tpu.memory_space<vmem>>, vector<1x8x32xf32>
      %256 = vector.shape_cast %255 : vector<1x8x32xf32> to vector<8x32xf32>
      %c0_285 = arith.constant 0 : index
      %c0_286 = arith.constant 0 : index
      %c0_287 = arith.constant 0 : index
      %257 = vector.load %arg4[%c0_285, %c0_286, %c0_287] : memref<3x32x32xf32, #tpu.memory_space<vmem>>, vector<1x32x32xf32>
      %258 = vector.shape_cast %257 : vector<1x32x32xf32> to vector<32x32xf32>
      %cst_288 = arith.constant dense<0.000000e+00> : vector<8x32xf32>
      %259 = tpu.matmul %256, %258, %cst_288 {dimension_numbers = #tpu.dot_dimension_numbers<[1], [0], [0], [1], [0, 0, 1, 1], [], []>} : vector<8x32xf32>, vector<32x32xf32>, vector<8x32xf32> -> vector<8x32xf32>
      %260 = arith.addf %254, %259 : vector<8x32xf32>
      %c0_289 = arith.constant 0 : index
      %c0_290 = arith.constant 0 : index
      %c224_291 = arith.constant 224 : index
      %261 = vector.load %arg6[%c0_289, %c0_290, %c224_291] : memref<1x8x256xf32, #tpu.memory_space<vmem>>, vector<1x8x32xf32>
      %262 = vector.shape_cast %261 : vector<1x8x32xf32> to vector<8x32xf32>
      %263 = vector.shape_cast %260 : vector<8x32xf32> to vector<1x8x32xf32>
      tpu.vector_store %arg6[%c0_289, %c0_290, %c224_291], %263 {strides = array<i32>} : memref<1x8x256xf32, #tpu.memory_space<vmem>>, vector<1x8x32xf32>,
      %c0_292 = arith.constant 0 : index
      %c0_293 = arith.constant 0 : index
      %c224_294 = arith.constant 224 : index
      %264 = vector.load %arg6[%c0_292, %c0_293, %c224_294] : memref<1x8x256xf32, #tpu.memory_space<vmem>>, vector<1x8x32xf32>
      %265 = vector.shape_cast %264 : vector<1x8x32xf32> to vector<8x32xf32>
      %c0_295 = arith.constant 0 : index
      %c8_296 = arith.constant 8 : index
      %c224_297 = arith.constant 224 : index
      %266 = vector.load %arg7[%c0_295, %c8_296, %c224_297] : memref<1x24x256xf32, #tpu.memory_space<vmem>>, vector<1x8x32xf32>
      %267 = vector.shape_cast %266 : vector<1x8x32xf32> to vector<8x32xf32>
      %c1_298 = arith.constant 1 : index
      %c0_299 = arith.constant 0 : index
      %c0_300 = arith.constant 0 : index
      %268 = vector.load %arg4[%c1_298, %c0_299, %c0_300] : memref<3x32x32xf32, #tpu.memory_space<vmem>>, vector<1x32x32xf32>
      %269 = vector.shape_cast %268 : vector<1x32x32xf32> to vector<32x32xf32>
      %cst_301 = arith.constant dense<0.000000e+00> : vector<8x32xf32>
      %270 = tpu.matmul %267, %269, %cst_301 {dimension_numbers = #tpu.dot_dimension_numbers<[1], [0], [0], [1], [0, 0, 1, 1], [], []>} : vector<8x32xf32>, vector<32x32xf32>, vector<8x32xf32> -> vector<8x32xf32>
      %271 = arith.addf %265, %270 : vector<8x32xf32>
      %c0_302 = arith.constant 0 : index
      %c0_303 = arith.constant 0 : index
      %c224_304 = arith.constant 224 : index
      %272 = vector.load %arg6[%c0_302, %c0_303, %c224_304] : memref<1x8x256xf32, #tpu.memory_space<vmem>>, vector<1x8x32xf32>
      %273 = vector.shape_cast %272 : vector<1x8x32xf32> to vector<8x32xf32>
      %274 = vector.shape_cast %271 : vector<8x32xf32> to vector<1x8x32xf32>
      tpu.vector_store %arg6[%c0_302, %c0_303, %c224_304], %274 {strides = array<i32>} : memref<1x8x256xf32, #tpu.memory_space<vmem>>, vector<1x8x32xf32>,
      %c0_305 = arith.constant 0 : index
      %c0_306 = arith.constant 0 : index
      %c224_307 = arith.constant 224 : index
      %275 = vector.load %arg6[%c0_305, %c0_306, %c224_307] : memref<1x8x256xf32, #tpu.memory_space<vmem>>, vector<1x8x32xf32>
      %276 = vector.shape_cast %275 : vector<1x8x32xf32> to vector<8x32xf32>
      %c0_308 = arith.constant 0 : index
      %c16_309 = arith.constant 16 : index
      %c224_310 = arith.constant 224 : index
      %277 = vector.load %arg7[%c0_308, %c16_309, %c224_310] : memref<1x24x256xf32, #tpu.memory_space<vmem>>, vector<1x8x32xf32>
      %278 = vector.shape_cast %277 : vector<1x8x32xf32> to vector<8x32xf32>
      %c2_311 = arith.constant 2 : index
      %c0_312 = arith.constant 0 : index
      %c0_313 = arith.constant 0 : index
      %279 = vector.load %arg4[%c2_311, %c0_312, %c0_313] : memref<3x32x32xf32, #tpu.memory_space<vmem>>, vector<1x32x32xf32>
      %280 = vector.shape_cast %279 : vector<1x32x32xf32> to vector<32x32xf32>
      %cst_314 = arith.constant dense<0.000000e+00> : vector<8x32xf32>
      %281 = tpu.matmul %278, %280, %cst_314 {dimension_numbers = #tpu.dot_dimension_numbers<[1], [0], [0], [1], [0, 0, 1, 1], [], []>} : vector<8x32xf32>, vector<32x32xf32>, vector<8x32xf32> -> vector<8x32xf32>
      %282 = arith.addf %276, %281 : vector<8x32xf32>
      %c0_315 = arith.constant 0 : index
      %c0_316 = arith.constant 0 : index
      %c224_317 = arith.constant 224 : index
      %283 = vector.load %arg6[%c0_315, %c0_316, %c224_317] : memref<1x8x256xf32, #tpu.memory_space<vmem>>, vector<1x8x32xf32>
      %284 = vector.shape_cast %283 : vector<1x8x32xf32> to vector<8x32xf32>
      %285 = vector.shape_cast %282 : vector<8x32xf32> to vector<1x8x32xf32>
      tpu.vector_store %arg6[%c0_315, %c0_316, %c224_317], %285 {strides = array<i32>} : memref<1x8x256xf32, #tpu.memory_space<vmem>>, vector<1x8x32xf32>,
    } else {
    }
    return
  }
  func.func @transform_0(%arg0: i32, %arg1: i32) -> (i32, i32) {
    %c0_i32 = arith.constant 0 : i32
    %c0_i32_0 = arith.constant 0 : i32
    return %c0_i32, %arg1 : i32, i32
  }
  func.func @transform_1(%arg0: i32, %arg1: i32) -> (i32, i32) {
    %c1_i32 = arith.constant 1 : i32
    %0 = arith.muli %arg0, %c1_i32 : i32
    %c0_i32 = arith.constant 0 : i32
    %1 = arith.addi %0, %c0_i32 : i32
    %2 = arith.addi %1, %arg1 : i32
    %c0_i32_0 = arith.constant 0 : i32
    %c0_i32_1 = arith.constant 0 : i32
    return %2, %c0_i32_0 : i32, i32
  }
  func.func @transform_2(%arg0: i32, %arg1: i32) -> (i32, i32, i32) {
    %c0_i32 = arith.constant 0 : i32
    %c0_i32_0 = arith.constant 0 : i32
    %c0_i32_1 = arith.constant 0 : i32
    %c0_i32_2 = arith.constant 0 : i32
    return %c0_i32, %c0_i32_0, %c0_i32_1 : i32, i32, i32
  }
  func.func @transform_3(%arg0: i32, %arg1: i32) -> (i32, i32) {
    %c0_i32 = arith.constant 0 : i32
    %c0_i32_0 = arith.constant 0 : i32
    %c0_i32_1 = arith.constant 0 : i32
    return %c0_i32, %c0_i32_0 : i32, i32
  }
  func.func @transform_4(%arg0: i32, %arg1: i32) -> (i32, i32, i32) {
    %c0_i32 = arith.constant 0 : i32
    %c0_i32_0 = arith.constant 0 : i32
    %c0_i32_1 = arith.constant 0 : i32
    return %arg0, %c0_i32, %c0_i32_0 : i32, i32, i32
  }
}

</mosaic_0001>

<bundles_post_ra>
// kernel: tpu_custom_call.1
= control target key start
LH: loop header
LB: loop body
LE: loop exit
PB: predicated region body
PF: predicated region fallthrough
CT: control target
= control target key end

     0   :  { %s2893_s0 = inlined_call_operand.hbm [shape: bf16[24,512], index: 0, kind: input, shape index: {}]   ;;  %s2894_s1 = inlined_call_operand.hbm [shape: bf16[1024,256], index: 1, kind: input, shape index: {}]   ;;  %s2895_s2 = inlined_call_operand.hbm [shape: f32[3,32,32], index: 2, kind: input, shape index: {}]   ;;  %s2896_s3 = inlined_call_operand.vmem [shape: f32[1,256], index: 3, kind: input, shape index: {}]   ;;  %s2897_s4 = inlined_call_operand.hbm [shape: f32[2,8,256], index: 4, kind: output, shape index: {}]  }
   0x1   :  { %2916 = sst [smem:[#allocation26_spill]] %s2893_s0 }
   0x2   :  { %2917 = sst [smem:[#allocation27_spill]] %s2895_s2 }
   0x3   :  { %2918 = sst [smem:[#allocation28_spill]] %s2896_s3 }
   0x4   :  { %2919 = sst [smem:[#allocation29_spill]] %s2897_s4 }
   0x5   :  { %9 = vsyncpa [#allocation4], 0 }
   0x6   :  { %11 = vsyncpa [#allocation4 + $0x1], 0 }
   0x7   :  { %12 = vsyncpa [#allocation7], 0 }
   0x8   :  { %14 = vsyncpa [#allocation7 + $0x1], 0 }
   0x9   :  { %15 = vsyncpa [#allocation5], 0 }
   0xa   :  { %17 = vsyncpa [#allocation5 + $0x1], 0  ;;  %s2260_s15 = smov 0   ;;  %s2262_s16 = smov 0  }
   0xb   :  { %s2264_s17 = smov 0   ;;  %s2266_s18 = smov 0  }
   0xc   :  { %s2268_s19 = smov 0   ;;  %s2270_s20 = smov 0  }
   0xd   :  { %s2272_s21 = smov 0   ;;  %s2274_s22 = smov 0  }
   0xe   :  { %s2276_s23 = smov 0   ;;  %s2278_s24 = smov 0  }
   0xf   :  { %s2280_s25 = smov 0   ;;  %s2282_s26 = smov 0  }
  0x10   :  { %s2284_s27 = smov 0   ;;  %s2286_s28 = smov 0  }
  0x11 LB: > { %2920 = sst [smem:[#allocation14_spill]] %s2173_s15  ;;  %s2327_s29 = sadd.s32 4294967295, %s2225_s28   ;;  %s2225_s28 = sphi %s2286_s28, %s23_s28   ;;  %s2221_s27 = sphi %s2284_s27, %s2971_s27   ;;  %s2217_s26 = sphi %s2282_s26, %s2961_s26   ;;  %s2213_s25 = sphi %s2280_s25, %s2970_s25   ;;  %s2209_s24 = sphi %s2278_s24, %s2960_s24   ;;  %s2205_s23 = sphi %s2276_s23, %s2969_s23   ;;  %s2201_s22 = sphi %s2274_s22, %s2968_s22   ;;  %s2197_s21 = sphi %s2272_s21, %s2967_s21   ;;  %s2193_s20 = sphi %s2270_s20, %s2966_s20   ;;  %s2189_s19 = sphi %s2268_s19, %s2965_s19   ;;  %s2185_s18 = sphi %s2266_s18, %s2958_s18   ;;  %s2181_s17 = sphi %s2264_s17, %s2964_s17   ;;  %s2177_s16 = sphi %s2262_s16, %s2963_s16   ;;  %s2173_s15 = sphi %s2260_s15, %s2957_s15  }
  0x12   : > { %2921 = sst [smem:[#allocation15_spill]] %s2177_s16  ;;  %s1611_s30 = sadd.s32 4294967294, %s2225_s28  }
  0x13   : > { %2922 = sst [smem:[#allocation16_spill]] %s2189_s19  ;;  %p55_p0 = scmp.ne.s32.totalorder %s2201_s22, %s2197_s21 }
  0x14   : > { %2923 = sst [smem:[#allocation17_spill]] %s2209_s24  ;;  %p56_p1 = scmp.eq.s32.totalorder %s2327_s29, 0 }
  0x15   : > { %2924 = sst [smem:[#allocation18_spill]] %s2213_s25  ;;  %p83_p2 = scmp.ne.s32.totalorder %s2189_s19, %s2185_s18 }
  0x16   : > { %2925 = sst [smem:[#allocation19_spill]] %s2217_s26  ;;  %p148_p3 = scmp.ne.s32.totalorder %s2181_s17, %s2177_s16 }
  0x17   : > { %2926 = sst [smem:[#allocation20_spill]] %s2327_s29  ;;  %p2337_p4 = por %p56_p1, %p55_p0 }
  0x18   : > { %p149_p5 = scmp.eq.s32.totalorder %s2327_s29, 3  ;;  %p2344_p6 = por %p83_p2, %p56_p1 }
  0x19   : > { %p154_p7 = scmp.ne.s32.totalorder %s2177_s16, %s2173_s15  ;;  %p155_p9 = scmp.eq.s32.totalorder %s1611_s30, 3 }
  0x1a   : > { %s2928_s6 = scalar_select %p2344_p6, 1, 0 }
  0x1b   : > { %p2350_p8 = por %p149_p5, %p148_p3  ;;  %p1612_p10 = scmp.ge.s32.totalorder %s2225_s28, 1 }
  0x1c   : > { %2929 = sst [smem:[#allocation21_spill]] %s2928_s6  ;;  %p162_p11 = scmp.lt.s32.totalorder %s2225_s28, 5 }
  0x1d   : > { %s2930_s7 = scalar_select %p2350_p8, 1, 0 }
  0x1e   : > { %p2356_p12 = por %p155_p9, %p154_p7  ;;  %p2360_p13 = pnand %p1612_p10, %p162_p11 }
  0x1f   : > { %2931 = sst [smem:[#allocation22_spill]] %s2930_s7  ;;  %s2227_s13 = smov [#allocation8]  }
  0x20   : > { %s2932_s8 = scalar_select %p2356_p12, 1, 0 }
  0x21   : > { %s2935_s2 = sld [smem:[#allocation27_spill]]  ;;  %p1842_p0 = pneg %p2360_p13 }
  0x22   : > { %2933 = sst [smem:[#allocation23_spill]] %s2932_s8  ;;  %s175_s14 = sshll.u32 %s2227_s13, 4  ;;  %s176_s14 = int_to_ptr.vmem [resolvable:$true] %s175_s14 }
  0x23   : > { %p1843_p2 = pnand %p1842_p0, %p56_p1  ;;  %s2899_s18 = smov 128  }
  0x24   : > { %s2901_s21 = smov 8   ;;  %p49_p3 = scmp.ne.s32.totalorder %s2205_s23, %s2201_s22 }
  0x25   : > { %p50_p5 = scmp.eq.s32.totalorder %s2225_s28, 0  ;;  %p1858_p7 = scmp.lt.s32.totalorder %s2225_s28, 4 }
  0x26   : > { %s192_s10 = sand.u32 1, %s2205_s23   ;;  %s1792_s11 = sshll.u32 %s2217_s26, 3 }
  0x27   : > { %s173_s12 = sshll.u32 %s2935_s2, 4  ;;  %p51_p9 = por %p50_p5, %p49_p3  ;;  %s174_s12 = int_to_ptr.hbm [resolvable:$true] %s173_s12 }
  0x28   : > { %1845 = dma.hbm_to_vmem [thread:$0]  (!%p1843_p2), %s174_s12, 1536, %s176_s14, [#allocation7], %s2899_s18, %s2899_s18, %s2901_s21  }
  0x29   : > { %s1830_s13 = smul.u32 24, %s192_s10  ;;  %s2936_s0 = sld [smem:[#allocation26_spill]] }
  0x2a   : > { %p1847_p10 = pnand %p1858_p7, %p51_p9  ;;  %s193_s21 = scalar_lea.sflag [#allocation4], %s192_s10 }
  0x2b   : > { %s196_s30 = scalar_lea.vmem [#allocation3], %s1830_s13  ;;  %s2230_s15 = smov 256  }
  0x2c   : > { %s204_s18 = sshll.u32 %s196_s30, 4  ;;  %s2937_s4 = smov 8   ;;  %s205_s18 = int_to_ptr.vmem [resolvable:$true] %s204_s18 }
  0x2d   : > { %s2938_s7 = smov 128   ;;  %s32_s2 = sadd.s32 1, %s2217_s26 }
  0x2e   : > { %s35_s8 = sadd.s32 1, %s2221_s27  ;;  %p33_p11 = scmp.ge.s32.totalorder %s32_s2, 2 }
  0x2f   : > { %s201_s12 = scalar_lea.hbm %s2936_s0, %s1792_s11  ;;  %s65_s11 = sadd.s32 %s2217_s26, %s2221_s27 }
  0x30   : > { %s202_s14 = sshll.u32 %s201_s12, 4  ;;  %s70_s12 = sadd.s32 1, %s2193_s20  ;;  %s203_s14 = int_to_ptr.hbm [resolvable:$true] %s202_s14 }
  0x31   : > { %1849 = dma.hbm_to_vmem [thread:$0]  (!%p1847_p10), %s203_s14, 384, %s205_s18, %s193_s21, %s2230_s15, %s2938_s7, %s2937_s4  }
  0x32   : > { %p77_p0 = scmp.ne.s32.totalorder %s2193_s20, %s2189_s19  ;;  %s2973_s2 = smov (%p33_p11, %s32_s2), 0 }
  0x33   : > { %2939 = sst [smem:[#allocation24_spill]] %s2973_s2  ;;  %s2975_s8 = smov (!%p33_p11, %s35_s8), %s2221_s27 }
  0x34   : > { %s39_s30 = ssub.s32 %s2217_s26, %s2973_s2  ;;  %p2404_p2 = por %p77_p0, %p50_p5 }
  0x35   : > { %p37_p3 = scmp.ge.s32.totalorder %s2975_s8, 2  ;;  %p40_p9 = scmp.eq.s32.totalorder %s39_s30, 0 }
  0x36   : > { %s138_s18 = sadd.s32 1, %s2181_s17  ;;  %s214_s21 = sand.u32 1, %s2225_s28  }
  0x37   : > { %s2977_s8 = smov (%p37_p3, %s2975_s8), 0  ;;  %s2941_s10 = sadd.s32 1, %s2205_s23 }
  0x38   : > { %s2415_s13 = scalar_select %p40_p9, %s2205_s23, %s2941_s10  }
  0x39   : > { %s66_s14 = sadd.s32 %s2977_s8, %s2973_s2  ;;  %s135_s0 = ssub.s32 %s2221_s27, %s2977_s8 }
  0x3a   : > { %2942 = sst [smem:[#allocation25_spill]] %s2415_s13  ;;  %s67_s26 = ssub.s32 %s65_s11, %s66_s14 }
  0x3b   : > { %p136_p5 = scmp.eq.s32.totalorder %s135_s0, 0  ;;  %p68_p10 = scmp.eq.s32.totalorder %s67_s26, 0 }
  0x3c   : > { %s216_s30 = sand.u32 1, %s2193_s20   ;;  %s1794_s24 = sshll.u32 %s65_s11, 8 }
  0x3d   : > { %s2422_s25 = scalar_select %p136_p5, %s2181_s17, %s138_s18  }
  0x3e   : > { %s2425_s3 = scalar_select %p68_p10, %s2193_s20, %s70_s12  }
  0x3f   : > { %s1617_s16 = sshll.u32 %s216_s30, 8  ;;  %s225_s29 = scalar_lea.hbm %s2894_s1, %s1794_s24 }
  0x40   : > { %s226_s10 = sshll.u32 %s225_s29, 4  ;;  %s218_s2 = scalar_lea.vmem [#allocation6], %s1617_s16  ;;  %s227_s10 = int_to_ptr.hbm [resolvable:$true] %s226_s10 }
  0x41   : > { %s228_s13 = sshll.u32 %s218_s2, 4  ;;  %p1850_p11 = pnand %p1858_p7, %p2404_p2  ;;  %s229_s13 = int_to_ptr.vmem [resolvable:$true] %s228_s13 }
  0x42   : > { %s215_s0 = scalar_lea.sflag [#allocation7], %s214_s21  ;;  %240 = sbr.rel (%p2360_p13) target bundleno = 792 (0x318), region = 36 }
  0x43   : > { %1852 = dma.hbm_to_vmem [thread:$0]  (!%p1850_p11), %s227_s10, 4096, %s229_s13, %s215_s0, %s2938_s7, %s2938_s7, %s2937_s4  }
  0x44   : > { %s242_s19 = sand.u32 (!%p2360_p13), 1, %s2201_s22  }
  0x45   : > { %s1831_s24 = smul.u32 (!%p2360_p13), 24, %s242_s19  ;;  %s243_s26 = scalar_lea.sflag (!%p2360_p13), [#allocation4], %s242_s19 }
  0x47   : > { %s2441_s29 = scalar_lea.vmem [#allocation3], %s1831_s24 }
  0x48   : > { %2156 = dma.done.wait (%p2337_p4), %s243_s26, 384  }
  0x49   : > { %2158 = vsyncadd (%p2337_p4), %s243_s26, 4294966912  ;;  %s2943_s16 = sld [smem:[#allocation20_spill]] }
  0x4a   : > { %s2944_s6 = sld [smem:[#allocation16_spill]] }
  0x4f   : > { %s252_s11 = sand.u32 1, %s2943_s16  }
  0x50   : > { %s254_s4 = sand.u32 1, %s2944_s6   ;;  %s253_s9 = scalar_lea.sflag [#allocation7], %s252_s11 }
  0x51   : > { %s1622_s7 = sshll.u32 %s254_s4, 8 }
  0x52   : > { %s2449_s12 = scalar_lea.vmem [#allocation6], %s1622_s7 }
  0x53   : > { %2160 = dma.done.wait (%p2344_p6), %s253_s9, 4096  }
  0x54   : > { %2162 = vsyncadd (%p2344_p6), %s253_s9, 4294963200 }
  0x55   : > { %2164 = dma.done.wait (%p56_p1), [#allocation7], 1536  }
  0x56   : > { %2166 = vsyncadd (%p56_p1), [#allocation7], 4294965760  ;;  %s2946_s5 = sld [smem:[#allocation15_spill]] }
  0x57   : > { %s2947_s13 = sld [smem:[#allocation17_spill]] }
  0x5c   : > { %s289_s15 = sand.u32 1, %s2946_s5  }
  0x5d   : > { %s1624_s18 = sshll.u32 %s289_s15, 4  ;;  %p1625_p4 = scmp.ne.s32.totalorder %s2947_s13, 0 }
  0x5e   : > { %s2462_s21 = scalar_lea.vmem [#allocation9], %s1624_s18 }
  0x5f   : > { %298 = sbr.rel (%p1625_p4) target bundleno = 107 (0x6b), region = 52 }
  0x64   : > { %v2231_v0 = vmov 0.0  }
  0x65   : > { %299 = vst [vmem:[#allocation2 + $0x28] sm:$0xff] %v2231_v0 }
  0x66   : > { %300 = vst [vmem:[#allocation2 + $0x10] sm:$0xff] %v2231_v0 }
  0x67   : > { %301 = vst [vmem:[#allocation2 + $0x8] sm:$0xff] %v2231_v0 }
  0x68   : > { %302 = vst [vmem:[#allocation2] sm:$0xff] %v2231_v0 }
  0x69   : > { %303 = vst [vmem:[#allocation2 + $0x18] sm:$0xff] %v2231_v0 }
  0x6a   : > { %304 = vst [vmem:[#allocation2 + $0x20] sm:$0xff] %v2231_v0 }
  0x6b PF: > { %v1692_v1 = vld [vmem:[%s2449_s12 + $0x70] sm:$0xf]  ;;  %v1812_v2 = vld [vmem:[%s2449_s12 + $0x74] sm:$0xf0]  ;;  %v1811_v6 = vld [vmem:[%s2449_s12 + $0x74] sm:$0xf] }
  0x6c   : > { %v1756_v3 = vld [vmem:[%s2449_s12 + $0xf0] sm:$0xf]  ;;  %v1693_v4 = vor.u32 %v1812_v2, %v1692_v1  ;;  %v1828_v5 = vld [vmem:[%s2449_s12 + $0xf4] sm:$0xf0]  ;;  %v1694_v7 = vld [vmem:[%s2449_s12 + $0x78] sm:$0xf0] }
  0x6d   : > { %v1757_v8 = vor.u32 %v1828_v5, %v1756_v3  ;;  %v1697_v9 = vor.u32 %v1811_v6, %v1694_v7  ;;  %v1827_v10 = vld [vmem:[%s2449_s12 + $0xf4] sm:$0xf]  ;;  %v1758_v11 = vld [vmem:[%s2449_s12 + $0xf8] sm:$0xf0]  ;;  %v1684_v12 = vld [vmem:[%s2449_s12 + $0x60] sm:$0xf] }
  0x6e   : > { %523 = vmatpush.bf16.msra.mxu0 %v1693_v4  ;;  %v1761_v13 = vor.u32 %v1827_v10, %v1758_v11  ;;  %v1810_v14 = vld [vmem:[%s2449_s12 + $0x64] sm:$0xf0]  ;;  %v1748_v15 = vld [vmem:[%s2449_s12 + $0xe0] sm:$0xf]  ;;  %v1809_v19 = vld [vmem:[%s2449_s12 + $0x64] sm:$0xf] }
  0x6f   : > { %v1826_v16 = vld [vmem:[%s2449_s12 + $0xe4] sm:$0xf0]  ;;  %541 = vmatpush.bf16.msra.mxu1 %v1757_v8  ;;  %559 = vmatpush.bf16.msra.mxu2 %v1697_v9  ;;  %v1685_v17 = vor.u32 %v1810_v14, %v1684_v12  ;;  %v1686_v20 = vld [vmem:[%s2449_s12 + $0x68] sm:$0xf0]  ;;  %v1825_v21 = vld [vmem:[%s2449_s12 + $0xe4] sm:$0xf] }
  0x70   : > { %v1749_v18 = vor.u32 %v1826_v16, %v1748_v15  ;;  %577 = vmatpush.bf16.msra.mxu3 %v1761_v13  ;;  %v1689_v22 = vor.u32 %v1809_v19, %v1686_v20  ;;  %v1750_v23 = vld [vmem:[%s2449_s12 + $0xe8] sm:$0xf0]  ;;  %v1676_v24 = vld [vmem:[%s2449_s12 + $0x50] sm:$0xf]  ;;  %v1808_v25 = vld [vmem:[%s2449_s12 + $0x54] sm:$0xf0] }
  0x71   : > { %v1753_v26 = vor.u32 %v1825_v21, %v1750_v23  ;;  %v1740_v27 = vld [vmem:[%s2449_s12 + $0xd0] sm:$0xf]  ;;  %v1824_v28 = vld [vmem:[%s2449_s12 + $0xd4] sm:$0xf0]  ;;  %v1807_v29 = vld [vmem:[%s2449_s12 + $0x54] sm:$0xf]  ;;  %v1677_v30 = vor.u32 %v1808_v25, %v1676_v24 }
  0x72   : > { %524 = vmatpush.bf16.msra.mxu0 %v1685_v17  ;;  %v1678_v31 = vld [vmem:[%s2449_s12 + $0x58] sm:$0xf0]  ;;  %v1823_v32 = vld [vmem:[%s2449_s12 + $0xd4] sm:$0xf]  ;;  %v1741_v34 = vor.u32 %v1824_v28, %v1740_v27  ;;  %v1668_v36 = vld [vmem:[%s2449_s12 + $0x40] sm:$0xf] }
  0x73   : > { %v1742_v33 = vld [vmem:[%s2449_s12 + $0xd8] sm:$0xf0]  ;;  %542 = vmatpush.bf16.msra.mxu1 %v1749_v18  ;;  %560 = vmatpush.bf16.msra.mxu2 %v1689_v22  ;;  %v1681_v35 = vor.u32 %v1807_v29, %v1678_v31  ;;  %v1806_v37 = vld [vmem:[%s2449_s12 + $0x44] sm:$0xf0]  ;;  %v1732_v38 = vld [vmem:[%s2449_s12 + $0xc0] sm:$0xf] }
  0x74   : > { %578 = vmatpush.bf16.msra.mxu3 %v1753_v26  ;;  %v1745_v39 = vor.u32 %v1823_v32, %v1742_v33  ;;  %v1822_v40 = vld [vmem:[%s2449_s12 + $0xc4] sm:$0xf0]  ;;  %v1805_v41 = vld [vmem:[%s2449_s12 + $0x44] sm:$0xf]  ;;  %v1670_v42 = vld [vmem:[%s2449_s12 + $0x48] sm:$0xf0]  ;;  %v1669_v45 = vor.u32 %v1806_v37, %v1668_v36 }
  0x75   : > { %v1821_v43 = vld [vmem:[%s2449_s12 + $0xc4] sm:$0xf]  ;;  %v1734_v44 = vld [vmem:[%s2449_s12 + $0xc8] sm:$0xf0]  ;;  %v1733_v46 = vor.u32 %v1822_v40, %v1732_v38  ;;  %v1673_v47 = vor.u32 %v1805_v41, %v1670_v42  ;;  %v1660_v48 = vld [vmem:[%s2449_s12 + $0x30] sm:$0xf] }
  0x76   : > { %525 = vmatpush.bf16.msra.mxu0 %v1677_v30  ;;  %v1804_v49 = vld [vmem:[%s2449_s12 + $0x34] sm:$0xf0]  ;;  %v1724_v50 = vld [vmem:[%s2449_s12 + $0xb0] sm:$0xf]  ;;  %v1737_v51 = vor.u32 %v1821_v43, %v1734_v44  ;;  %v1803_v53 = vld [vmem:[%s2449_s12 + $0x34] sm:$0xf] }
  0x77   : > { %543 = vmatpush.bf16.msra.mxu1 %v1741_v34  ;;  %561 = vmatpush.bf16.msra.mxu2 %v1681_v35  ;;  %v1820_v52 = vld [vmem:[%s2449_s12 + $0xb4] sm:$0xf0]  ;;  %v1662_v54 = vld [vmem:[%s2449_s12 + $0x38] sm:$0xf0]  ;;  %v1819_v55 = vld [vmem:[%s2449_s12 + $0xb4] sm:$0xf]  ;;  %v1661_v57 = vor.u32 %v1804_v49, %v1660_v48 }
  0x78   : > { %579 = vmatpush.bf16.msra.mxu3 %v1745_v39  ;;  %v1726_v56 = vld [vmem:[%s2449_s12 + $0xb8] sm:$0xf0]  ;;  %v1725_v58 = vor.u32 %v1820_v52, %v1724_v50  ;;  %v1665_v59 = vor.u32 %v1803_v53, %v1662_v54  ;;  %v1652_v60 = vld [vmem:[%s2449_s12 + $0x20] sm:$0xf]  ;;  %v1802_v61 = vld [vmem:[%s2449_s12 + $0x24] sm:$0xf0] }
  0x79   : > { %v1716_v62 = vld [vmem:[%s2449_s12 + $0xa0] sm:$0xf]  ;;  %v1729_v63 = vor.u32 %v1819_v55, %v1726_v56  ;;  %v1818_v0 = vld [vmem:[%s2449_s12 + $0xa4] sm:$0xf0]  ;;  %v1801_v1 = vld [vmem:[%s2449_s12 + $0x24] sm:$0xf]  ;;  %v1653_v5 = vor.u32 %v1802_v61, %v1652_v60 }
  0x7a   : > { %526 = vmatpush.bf16.msra.mxu0 %v1669_v45  ;;  %v1654_v2 = vld [vmem:[%s2449_s12 + $0x28] sm:$0xf0]  ;;  %v1817_v3 = vld [vmem:[%s2449_s12 + $0xa4] sm:$0xf]  ;;  %v1717_v6 = vor.u32 %v1818_v0, %v1716_v62  ;;  %v1644_v8 = vld [vmem:[%s2449_s12 + $0x10] sm:$0xf] }
  0x7b   : > { %544 = vmatpush.bf16.msra.mxu1 %v1733_v46  ;;  %562 = vmatpush.bf16.msra.mxu2 %v1673_v47  ;;  %v1718_v4 = vld [vmem:[%s2449_s12 + $0xa8] sm:$0xf0]  ;;  %v1657_v7 = vor.u32 %v1801_v1, %v1654_v2  ;;  %v1800_v9 = vld [vmem:[%s2449_s12 + $0x14] sm:$0xf0]  ;;  %v1708_v10 = vld [vmem:[%s2449_s12 + $0x90] sm:$0xf] }
  0x7c   : > { %580 = vmatpush.bf16.msra.mxu3 %v1737_v51  ;;  %v1721_v11 = vor.u32 %v1817_v3, %v1718_v4  ;;  %v1816_v12 = vld [vmem:[%s2449_s12 + $0x94] sm:$0xf0]  ;;  %v1799_v13 = vld [vmem:[%s2449_s12 + $0x14] sm:$0xf]  ;;  %v1646_v14 = vld [vmem:[%s2449_s12 + $0x18] sm:$0xf0]  ;;  %v1645_v17 = vor.u32 %v1800_v9, %v1644_v8 }
  0x7d   : > { %v1815_v15 = vld [vmem:[%s2449_s12 + $0x94] sm:$0xf]  ;;  %v1710_v16 = vld [vmem:[%s2449_s12 + $0x98] sm:$0xf0]  ;;  %v1709_v18 = vor.u32 %v1816_v12, %v1708_v10  ;;  %v1649_v19 = vor.u32 %v1799_v13, %v1646_v14  ;;  %v1636_v20 = vld [vmem:[%s2449_s12] sm:$0xf] }
  0x7e   : > { %527 = vmatpush.bf16.msra.mxu0 %v1661_v57  ;;  %v1798_v21 = vld [vmem:[%s2449_s12 + $0x4] sm:$0xf0]  ;;  %v1700_v22 = vld [vmem:[%s2449_s12 + $0x80] sm:$0xf]  ;;  %v1713_v23 = vor.u32 %v1815_v15, %v1710_v16  ;;  %v1797_v25 = vld [vmem:[%s2449_s12 + $0x4] sm:$0xf] }
  0x7f   : > { %545 = vmatpush.bf16.msra.mxu1 %v1725_v58  ;;  %563 = vmatpush.bf16.msra.mxu2 %v1665_v59  ;;  %v1814_v24 = vld [vmem:[%s2449_s12 + $0x84] sm:$0xf0]  ;;  %v1638_v26 = vld [vmem:[%s2449_s12 + $0x8] sm:$0xf0]  ;;  %v1813_v27 = vld [vmem:[%s2449_s12 + $0x84] sm:$0xf]  ;;  %v1637_v29 = vor.u32 %v1798_v21, %v1636_v20 }
  0x80   : > { %581 = vmatpush.bf16.msra.mxu3 %v1729_v63  ;;  %v1702_v28 = vld [vmem:[%s2449_s12 + $0x88] sm:$0xf0]  ;;  %v1628_v30 = vld [vmem:[%s2441_s29] sm:$0xf]  ;;  %v1796_v31 = vld [vmem:[%s2441_s29 + $0x4] sm:$0xf0]  ;;  %v1701_v32 = vor.u32 %v1814_v24, %v1700_v22  ;;  %v1641_v33 = vor.u32 %v1797_v25, %v1638_v26 }
  0x81   : > { %v1795_v34 = vld [vmem:[%s2441_s29 + $0x4] sm:$0xf]  ;;  %v1630_v35 = vld [vmem:[%s2441_s29 + $0x8] sm:$0xf0]  ;;  %v1705_v36 = vor.u32 %v1813_v27, %v1702_v28  ;;  %v1629_v37 = vor.u32 %v1796_v31, %v1628_v30  ;;  %v307_v39 = vld [vmem:[%s2441_s29 + $0x10] sm:$0xff]  ;;  %s2948_s14 = sld [smem:[#allocation17_spill]] }
  0x82   : > { %528 = vmatpush.bf16.msra.mxu0 %v1653_v5  ;;  %v1633_v38 = vor.u32 %v1795_v34, %v1630_v35  ;;  %v353_v40 = vunpack.c.l.b16 %v307_v39  ;;  %v354_v41 = vunpack.c.h.b16 %v307_v39  ;;  %v308_v45 = vld [vmem:[#allocation2 + $0x28] sm:$0xff]  ;;  %v309_v50 = vld [vmem:[#allocation2 + $0x10] sm:$0xff]  ;;  %v311_v60 = vld [vmem:[#allocation2] sm:$0xff] }
  0x83   : > { %546 = vmatpush.bf16.msra.mxu1 %v1717_v6  ;;  %564 = vmatpush.bf16.msra.mxu2 %v1657_v7  ;;  %v310_v54 = vld [vmem:[#allocation2 + $0x8] sm:$0xff]  ;;  %v312_v0 = vld [vmem:[#allocation2 + $0x18] sm:$0xff]  ;;  %v313_v6 = vld [vmem:[#allocation2 + $0x20] sm:$0xff] }
  0x84   : > { %582 = vmatpush.bf16.msra.mxu3 %v1721_v11  ;;  %v357_v42 = vpack.c.b16 %v353_v40, %v353_v40  ;;  %v358_v43 = vpack.c.b16 %v354_v41, %v354_v41 }
  0x86   : > { %529 = vmatpush.bf16.msra.mxu0 %v1645_v17 }
  0x87   : > { %547 = vmatpush.bf16.msra.mxu1 %v1709_v18  ;;  %565 = vmatpush.bf16.msra.mxu2 %v1649_v19  ;;  %p1762_p1 = scmp.ne.s32.totalorder %s2948_s14, 1 }
  0x88   : > { %583 = vmatpush.bf16.msra.mxu3 %v1713_v23  ;;  %s2232_s30 = smov (!%p1762_p1), 96   ;;  %s2233_s10 = smov (!%p1762_p1), 64  }
  0x89   : > { %s2234_s0 = smov (!%p1762_p1), 32   ;;  %s2949_s26 = sld [smem:[#allocation28_spill]] (!%p1762_p1) }
  0x8a   : > { %530 = vmatpush.bf16.msra.mxu0 %v1637_v29 }
  0x8b   : > { %548 = vmatpush.bf16.msra.mxu1 %v1701_v32  ;;  %566 = vmatpush.bf16.msra.mxu2 %v1641_v33 }
  0x8c   : > { %584 = vmatpush.bf16.msra.mxu3 %v1705_v36 }
  0x8d   : > { %531 = vmatmul.bf16.vlgmr.msra.gmra.mxu0 %v1629_v37 }
  0x8e   : > { %549 = vmatmul.bf16.vlgmr.msra.gmra.mxu1 %v1633_v38  ;;  %567 = vmatmul.bf16.vlgmr.msra.gmra.mxu2 %v1629_v37 }
  0x8f   : > { %585 = vmatmul.bf16.vlgmr.msra.gmra.mxu3 %v1633_v38 }
  0x9d   : > { %536 = vmatmul.bf16.gmra.mxu0 %v357_v42 }
  0x9e   : > { %554 = vmatmul.bf16.gmra.mxu1 %v358_v43  ;;  %572 = vmatmul.bf16.gmra.mxu2 %v357_v42 }
  0x9f   : > { %590 = vmatmul.bf16.gmra.mxu3 %v358_v43 }
 0x10a   : > { %v532_v44 = vpop.f32.mrf.mxu0 }
 0x10b   : > { %v550_v46 = vpop.f32.mrf.mxu1 }
 0x10c   : > { %v551_v47 = vadd.f32 %v550_v46, %v532_v44 }
 0x10e   : > { %v595_v48 = vadd.f32 %v551_v47, %v308_v45 }
 0x110   : > { %601 = vst [vmem:[#allocation2 + $0x28] sm:$0xff] %v595_v48 }
 0x111   : > { %v568_v49 = vpop.f32.mrf.mxu2 }
 0x112   : > { %v586_v51 = vpop.f32.mrf.mxu3  ;;  %v534_v52 = vpop.f32.mrf.mxu0 }
 0x113   : > { %v587_v53 = vadd.f32 %v586_v51, %v568_v49  ;;  %v552_v55 = vpop.f32.mrf.mxu1 }
 0x114   : > { %v553_v56 = vadd.f32 %v552_v55, %v534_v52 }
 0x115   : > { %v596_v57 = vadd.f32 %v587_v53, %v309_v50 }
 0x116   : > { %v597_v58 = vadd.f32 %v553_v56, %v310_v54 }
 0x117   : > { %602 = vst [vmem:[#allocation2 + $0x10] sm:$0xff] %v596_v57 }
 0x118   : > { %603 = vst [vmem:[#allocation2 + $0x8] sm:$0xff] %v597_v58 }
 0x119   : > { %v570_v59 = vpop.f32.mrf.mxu2 }
 0x11a   : > { %v588_v61 = vpop.f32.mrf.mxu3  ;;  %v537_v62 = vpop.f32.mrf.mxu0 }
 0x11b   : > { %v589_v63 = vadd.f32 %v588_v61, %v570_v59  ;;  %v555_v1 = vpop.f32.mrf.mxu1 }
 0x11c   : > { %v556_v2 = vadd.f32 %v555_v1, %v537_v62 }
 0x11d   : > { %v598_v3 = vadd.f32 %v589_v63, %v311_v60 }
 0x11e   : > { %v599_v4 = vadd.f32 %v556_v2, %v312_v0 }
 0x11f   : > { %604 = vst [vmem:[#allocation2] sm:$0xff] %v598_v3 }
 0x120   : > { %605 = vst [vmem:[#allocation2 + $0x18] sm:$0xff] %v599_v4 }
 0x121   : > { %v573_v5 = vpop.f32.mrf.mxu2 }
 0x122   : > { %v591_v7 = vpop.f32.mrf.mxu3  ;;  %v539_v8 = vpop.f32.mrf.mxu0 }
 0x123   : > { %v592_v9 = vadd.f32 %v591_v7, %v573_v5  ;;  %v557_v10 = vpop.f32.mrf.mxu1 }
 0x125   : > { %v600_v11 = vadd.f32 %v592_v9, %v313_v6 }
 0x126   : > { %610 = sbr.rel (%p1762_p1) target bundleno = 771 (0x303), region = 56 }
 0x127   : > { %606 = vst [vmem:[#allocation2 + $0x20] sm:$0xff] %v600_v11 }
 0x129   : > { %v575_v12 = vpop.f32.mrf.mxu2 }
 0x12a   : > { %v593_v13 = vpop.f32.mrf.mxu3 }
 0x12b   : > { %v2535_v14 = vld [vmem:[#allocation2 + $0x8] sm:$0xff]  ;;  %v2540_v16 = vld [vmem:[#allocation2 + $0x18] sm:$0xff]  ;;  %v2544_v17 = vld [vmem:[#allocation2 + $0x10] sm:$0xff]  ;;  %vm627_vm0 = vcmask 261120   ;;  %vm753_vm1 = vcmask 523520   ;;  %vm865_vm2 = vcmask 785920  }
 0x12c   : > { %v718_v15 = vld [vmem:[#allocation2 + $0x28] sm:$0xff]  ;;  %762 = vrot.lane.b32.xlu1 %v2535_v14, %s2232_s30  ;;  %911 = vrot.lane.b32.xlu2 %v2540_v16, %s2233_s10  ;;  %v2550_v18 = vld [vmem:[#allocation8 + $0x18] sm:$0xff]  ;;  %v2552_v19 = vld [vmem:[#allocation8 + $0x10] sm:$0xff]  ;;  %vm977_vm3 = vcmask 1048320  }
 0x12d   : > { %724 = vrot.lane.b32.xlu0 %v718_v15, %s2232_s30  ;;  %643 = vmatpush.msra.mxu0 %v2550_v18  ;;  %v2557_v20 = vld [vmem:[#allocation8 + $0x38] sm:$0xff]  ;;  %v2559_v21 = vld [vmem:[#allocation8 + $0x8] sm:$0xff]  ;;  %v2564_v22 = vld [vmem:[#allocation8] sm:$0xff] }
 0x12e   : > { %740 = vmatpush.msra.mxu3 %v2550_v18  ;;  %675 = vmatpush.msra.mxu1 %v2557_v20  ;;  %v2578_v23 = vld [vmem:[#allocation2] sm:$0xff]  ;;  %v2600_v25 = vld [vmem:[#allocation8 + $0x30] sm:$0xff]  ;;  %v2604_v26 = vld [vmem:[#allocation8 + $0x58] sm:$0xff] }
 0x12f   : > { %644 = vmatpush.msra.mxu0 %v2552_v19  ;;  %v2580_v24 = vld [vmem:[#allocation2 + $0x20] sm:$0xff]  ;;  %v2606_v27 = vld [vmem:[#allocation8 + $0x28] sm:$0xff]  ;;  %v2609_v28 = vld [vmem:[#allocation8 + $0x50] sm:$0xff]  ;;  %707 = vmatpush.msra.mxu2 %v2604_v26 }
 0x130   : > { %741 = vmatpush.msra.mxu3 %v2552_v19  ;;  %676 = vmatpush.msra.mxu1 %v2600_v25  ;;  %v2613_v29 = vld [vmem:[#allocation8 + $0x20] sm:$0xff]  ;;  %v2617_v30 = vld [vmem:[#allocation8 + $0x48] sm:$0xff] }
 0x131   : > { %645 = vmatpush.msra.mxu0 %v2559_v21  ;;  %708 = vmatpush.msra.mxu2 %v2609_v28  ;;  %v2625_v31 = vld [vmem:[#allocation8 + $0x40] sm:$0xff] }
 0x132   : > { %742 = vmatpush.msra.mxu3 %v2559_v21  ;;  %677 = vmatpush.msra.mxu1 %v2606_v27  ;;  %v2676_v41 = vld [vmem:[%s2949_s26] sm:$0x3] }
 0x133   : > { %646 = vmatpush.msra.mxu0 %v2564_v22  ;;  %709 = vmatpush.msra.mxu2 %v2617_v30  ;;  %v613_v42 = vperm.slane %v2676_v41, 0  ;;  %v614_v57 = vperm.slane %v2676_v41, 1 }
 0x134   : > { %1023 = vrot.lane.b32.xlu1 %v2540_v16, %s2234_s0  ;;  %1153 = vrot.lane.b32.xlu2 %v2544_v17, %s2232_s30 }
 0x135   : > { %874 = vrot.lane.b32.xlu0 %v2535_v14, %s2233_s10  ;;  %1763 = vmatmul.msk.f32.vlgmr.msra.gmra.mxu0 %vm627_vm0, %v718_v15  ;;  %619 = vst [vmem:[%s2462_s21] sm:$0xff] %v613_v42 }
 0x136   : > { %778 = vmatpush.msrb.mxu0 %v2557_v20  ;;  %743 = vmatpush.msra.mxu3 %v2564_v22  ;;  %620 = vst [vmem:[%s2462_s21 + $0x8] sm:$0xff] %v614_v57 }
 0x137   : > { %678 = vmatpush.msra.mxu1 %v2613_v29  ;;  %710 = vmatpush.msra.mxu2 %v2625_v31 }
 0x138   : > { %890 = vmatpush.msrb.mxu3 %v2557_v20  ;;  %779 = vmatpush.msrb.mxu0 %v2600_v25 }
 0x139   : > { %1764 = vmatmul.msk.f32.vlgmr.msra.gmra.mxu1 %vm627_vm0, %v2535_v14  ;;  %1765 = vmatmul.msk.f32.vlgmr.msra.gmra.mxu2 %vm627_vm0, %v2540_v16 }
 0x13a   : > { %891 = vmatpush.msrb.mxu3 %v2600_v25  ;;  %780 = vmatpush.msrb.mxu0 %v2606_v27 }
 0x13b   : > { %815 = vmatpush.msrb.mxu1 %v2604_v26  ;;  %852 = vmatpush.msrb.mxu2 %v2550_v18 }
 0x13c   : > { %836 = vrot.lane.b32.xlu1 %v718_v15, %s2233_s10  ;;  %948 = vrot.lane.b32.xlu2 %v718_v15, %s2234_s0 }
 0x13d   : > { %799 = vrot.lane.b32.xlu0 %v2540_v16, %s2232_s30  ;;  %892 = vmatpush.msrb.mxu3 %v2606_v27 }
 0x13e   : > { %781 = vmatpush.msrb.mxu0 %v2613_v29  ;;  %816 = vmatpush.msrb.mxu1 %v2609_v28 }
 0x13f   : > { %893 = vmatpush.msrb.mxu3 %v2613_v29  ;;  %853 = vmatpush.msrb.mxu2 %v2552_v19 }
 0x140   : > { %927 = vmatpush.msra.mxu0 %v2604_v26  ;;  %817 = vmatpush.msrb.mxu1 %v2617_v30 }
 0x141   : > { %854 = vmatpush.msrb.mxu2 %v2559_v21 }
 0x142   : > { %928 = vmatpush.msra.mxu0 %v2609_v28  ;;  %818 = vmatpush.msrb.mxu1 %v2625_v31 }
 0x143   : > { %855 = vmatpush.msrb.mxu2 %v2564_v22 }
 0x144   : > { %1190 = vrot.lane.b32.xlu1 %v2578_v23, %s2232_s30  ;;  %1227 = vrot.lane.b32.xlu2 %v2580_v24, %s2232_s30 }
 0x145   : > { %986 = vrot.lane.b32.xlu0 %v2535_v14, %s2234_s0  ;;  %929 = vmatpush.msra.mxu0 %v2617_v30 }
 0x146   : > { %964 = vmatpush.msra.mxu1 %v2550_v18  ;;  %1002 = vmatpush.msra.mxu2 %v2557_v20 }
 0x147   : > { %930 = vmatpush.msra.mxu0 %v2625_v31 }
 0x148   : > { %965 = vmatpush.msra.mxu1 %v2552_v19  ;;  %1003 = vmatpush.msra.mxu2 %v2600_v25 }
 0x14a   : > { %966 = vmatpush.msra.mxu1 %v2559_v21  ;;  %1004 = vmatpush.msra.mxu2 %v2606_v27 }
 0x14c   : > { %1301 = vrot.lane.b32.xlu1 %v2578_v23, %s2233_s10  ;;  %1338 = vrot.lane.b32.xlu2 %v2580_v24, %s2233_s10 }
 0x14d   : > { %1264 = vrot.lane.b32.xlu0 %v2544_v17, %s2233_s10  ;;  %967 = vmatpush.msra.mxu1 %v2564_v22 }
 0x14e   : > { %1005 = vmatpush.msra.mxu2 %v2613_v29 }
 0x154   : > { %1412 = vrot.lane.b32.xlu1 %v2578_v23, %s2234_s0  ;;  %1449 = vrot.lane.b32.xlu2 %v2580_v24, %s2234_s0 }
 0x155   : > { %1375 = vrot.lane.b32.xlu0 %v2544_v17, %s2234_s0 }
 0x186   : > { %v912_v32 = vpop.permute.xlu2 %911 }
 0x18e   : > { %v1154_v35 = vpop.permute.xlu2 %1153 }
 0x196   : > { %v949_v40 = vpop.permute.xlu2 %948 }
 0x19e   : > { %v763_v33 = vpop.permute.xlu1 %762  ;;  %v1228_v45 = vpop.permute.xlu2 %1227 }
 0x19f   : > { %v725_v34 = vpop.permute.xlu0 %724  ;;  %1767 = vmatmul.msk.f32.vlgmr.msrb.gmra.mxu0 %vm627_vm0, %v763_v33 }
 0x1a0   : > { %1766 = vmatmul.msk.f32.vlgmr.msra.gmra.mxu3 %vm627_vm0, %v725_v34  ;;  %1074 = vmatpush.msrb.mxu0 %v2550_v18 }
 0x1a1   : > { %1039 = vmatpush.msra.mxu3 %v2604_v26 }
 0x1a2   : > { %1075 = vmatpush.msrb.mxu0 %v2552_v19 }
 0x1a3   : > { %1040 = vmatpush.msra.mxu3 %v2609_v28 }
 0x1a4   : > { %1076 = vmatpush.msrb.mxu0 %v2559_v21 }
 0x1a5   : > { %1041 = vmatpush.msra.mxu3 %v2617_v30 }
 0x1a6   : > { %v1024_v36 = vpop.permute.xlu1 %1023  ;;  %1077 = vmatpush.msrb.mxu0 %v2564_v22  ;;  %v1339_v49 = vpop.permute.xlu2 %1338 }
 0x1a7   : > { %v875_v37 = vpop.permute.xlu0 %874  ;;  %1042 = vmatpush.msra.mxu3 %v2625_v31  ;;  %1771 = vmatmul.msk.f32.vlgmr.msra.gmra.mxu0 %vm627_vm0, %v912_v32 }
 0x1a8   : > { %1770 = vmatmul.msk.f32.vlgmr.msrb.gmra.mxu3 %vm627_vm0, %v875_v37  ;;  %1206 = vmatpush.msra.mxu0 %v2557_v20 }
 0x1a9   : > { %1169 = vmatpush.msrb.mxu3 %v2550_v18 }
 0x1aa   : > { %1207 = vmatpush.msra.mxu0 %v2600_v25 }
 0x1ab   : > { %1170 = vmatpush.msrb.mxu3 %v2552_v19 }
 0x1ac   : > { %1208 = vmatpush.msra.mxu0 %v2606_v27 }
 0x1ad   : > { %1171 = vmatpush.msrb.mxu3 %v2559_v21 }
 0x1ae   : > { %v837_v38 = vpop.permute.xlu1 %836  ;;  %1209 = vmatpush.msra.mxu0 %v2613_v29  ;;  %v1450_v51 = vpop.permute.xlu2 %1449 }
 0x1af   : > { %v800_v39 = vpop.permute.xlu0 %799  ;;  %1172 = vmatpush.msrb.mxu3 %v2564_v22  ;;  %1769 = vmatmul.msk.f32.vlgmr.msrb.gmra.mxu2 %vm627_vm0, %v837_v38 }
 0x1b0   : > { %1768 = vmatmul.msk.f32.vlgmr.msrb.gmra.mxu1 %vm627_vm0, %v800_v39  ;;  %1774 = vmatmul.msk.f32.vlgmr.msra.gmra.mxu3 %vm627_vm0, %v1024_v36 }
 0x1b1   : > { %1775 = vmatmul.msk.f32.vlgmr.msrb.gmra.mxu0 %vm627_vm0, %v2544_v17  ;;  %1105 = vmatpush.msrb.mxu1 %v2557_v20 }
 0x1b2   : > { %1136 = vmatpush.msrb.mxu2 %v2604_v26  ;;  %1317 = vmatpush.msra.mxu3 %v2557_v20  ;;  %v648_v46 = vpop.f32.mrf.mxu0 }
 0x1b3   : > { %1354 = vmatpush.msrb.mxu0 %v2604_v26  ;;  %1106 = vmatpush.msrb.mxu1 %v2600_v25  ;;  %v651_v47 = vadd.f32 %v648_v46, %v613_v42 }
 0x1b4   : > { %1137 = vmatpush.msrb.mxu2 %v2609_v28  ;;  %1318 = vmatpush.msra.mxu3 %v2600_v25 }
 0x1b5   : > { %1355 = vmatpush.msrb.mxu0 %v2609_v28  ;;  %1107 = vmatpush.msrb.mxu1 %v2606_v27  ;;  %652 = vst.msk [vmem:[%s2462_s21] sm:$0xff] %vm627_vm0, %v651_v47 }
 0x1b6   : > { %1138 = vmatpush.msrb.mxu2 %v2617_v30  ;;  %v1191_v44 = vpop.permute.xlu1 %1190  ;;  %1319 = vmatpush.msra.mxu3 %v2606_v27  ;;  %v680_v55 = vpop.f32.mrf.mxu1 }
 0x1b7   : > { %v987_v43 = vpop.permute.xlu0 %986  ;;  %1356 = vmatpush.msrb.mxu0 %v2617_v30  ;;  %1108 = vmatpush.msrb.mxu1 %v2613_v29 }
 0x1b8   : > { %1772 = vmatmul.msk.f32.vlgmr.msra.gmra.mxu1 %vm627_vm0, %v949_v40  ;;  %1773 = vmatmul.msk.f32.vlgmr.msra.gmra.mxu2 %vm627_vm0, %v987_v43 }
 0x1b9   : > { %1778 = vmatmul.msk.f32.vlgmr.msrb.gmra.mxu3 %vm627_vm0, %v1154_v35  ;;  %1779 = vmatmul.msk.f32.vlgmr.msra.gmra.mxu0 %vm627_vm0, %v1191_v44 }
 0x1ba   : > { %1139 = vmatpush.msrb.mxu2 %v2625_v31  ;;  %1243 = vmatpush.msra.mxu1 %v2604_v26 }
 0x1bb   : > { %1320 = vmatpush.msra.mxu3 %v2613_v29  ;;  %1357 = vmatpush.msrb.mxu0 %v2625_v31 }
 0x1bc   : > { %1280 = vmatpush.msra.mxu2 %v2550_v18  ;;  %1244 = vmatpush.msra.mxu1 %v2609_v28  ;;  %v653_v54 = vld [vmem:[%s2462_s21] sm:$0xff]  ;;  %v712_v59 = vpop.f32.mrf.mxu2 }
 0x1bd   : > { %1465 = vmatpush.msrb.mxu3 %v2604_v26  ;;  %v683_v56 = vadd.f32 %v680_v55, %v653_v54 }
 0x1be   : > { %1281 = vmatpush.msra.mxu2 %v2552_v19  ;;  %1245 = vmatpush.msra.mxu1 %v2617_v30  ;;  %v1302_v48 = vpop.permute.xlu1 %1301 }
 0x1bf   : > { %1466 = vmatpush.msrb.mxu3 %v2609_v28  ;;  %v1265_v50 = vpop.permute.xlu0 %1264  ;;  %684 = vst.msk [vmem:[%s2462_s21] sm:$0xff] %vm627_vm0, %v683_v56 }
 0x1c0   : > { %1282 = vmatpush.msra.mxu2 %v2559_v21  ;;  %1776 = vmatmul.msk.f32.vlgmr.msrb.gmra.mxu1 %vm627_vm0, %v2578_v23 }
 0x1c1   : > { %1777 = vmatmul.msk.f32.vlgmr.msrb.gmra.mxu2 %vm627_vm0, %v2580_v24  ;;  %1246 = vmatpush.msra.mxu1 %v2625_v31 }
 0x1c2   : > { %1283 = vmatpush.msra.mxu2 %v2564_v22  ;;  %1782 = vmatmul.msk.f32.vlgmr.msra.gmra.mxu3 %vm627_vm0, %v1302_v48 }
 0x1c3   : > { %1391 = vmatpush.msrb.mxu1 %v2550_v18  ;;  %1783 = vmatmul.msk.f32.vlgmr.msrb.gmra.mxu0 %vm627_vm0, %v1339_v49 }
 0x1c4   : > { %1428 = vmatpush.msrb.mxu2 %v2557_v20  ;;  %1467 = vmatpush.msrb.mxu3 %v2617_v30 }
 0x1c5   : > { %1392 = vmatpush.msrb.mxu1 %v2552_v19 }
 0x1c6   : > { %1429 = vmatpush.msrb.mxu2 %v2600_v25  ;;  %1468 = vmatpush.msrb.mxu3 %v2625_v31  ;;  %v1413_v53 = vpop.permute.xlu1 %1412  ;;  %v685_v58 = vld [vmem:[%s2462_s21] sm:$0xff] }
 0x1c7   : > { %1393 = vmatpush.msrb.mxu1 %v2559_v21  ;;  %v1376_v52 = vpop.permute.xlu0 %1375  ;;  %v715_v60 = vadd.f32 %v712_v59, %v685_v58 }
 0x1c8   : > { %1430 = vmatpush.msrb.mxu2 %v2606_v27  ;;  %1780 = vmatmul.msk.f32.vlgmr.msra.gmra.mxu1 %vm627_vm0, %v1228_v45 }
 0x1c9   : > { %1781 = vmatmul.msk.f32.vlgmr.msra.gmra.mxu2 %vm627_vm0, %v1265_v50  ;;  %1394 = vmatpush.msrb.mxu1 %v2564_v22  ;;  %716 = vst.msk [vmem:[%s2462_s21] sm:$0xff] %vm627_vm0, %v715_v60 }
 0x1ca   : > { %1431 = vmatpush.msrb.mxu2 %v2613_v29  ;;  %1786 = vmatmul.msk.f32.vlgmr.msrb.gmra.mxu3 %vm627_vm0, %v1450_v51 }
 0x1d0   : > { %1784 = vmatmul.msk.f32.vlgmr.msrb.gmra.mxu1 %vm627_vm0, %v1376_v52  ;;  %v717_v24 = vld [vmem:[%s2462_s21] sm:$0xff] }
 0x1d1   : > { %1785 = vmatmul.msk.f32.vlgmr.msrb.gmra.mxu2 %vm627_vm0, %v1413_v53 }
 0x21c   : > { %v783_v61 = vpop.f32.mrf.mxu0 }
 0x21d   : > { %787 = vrot.lane.b32.xlu2 %v783_v61, %s2234_s0 }
 0x223   : > { %v745_v62 = vpop.f32.mrf.mxu3 }
 0x224   : > { %749 = vrot.lane.b32.xlu0 %v745_v62, %s2234_s0  ;;  %v932_v63 = vpop.f32.mrf.mxu0 }
 0x22b   : > { %v895_v0 = vpop.f32.mrf.mxu3 }
 0x22d   : > { %v820_v1 = vpop.f32.mrf.mxu1 }
 0x22e   : > { %v1079_v2 = vpop.f32.mrf.mxu0 }
 0x22f   : > { %v1082_v3 = vadd.f32 %v1079_v2, %v614_v57 }
 0x231   : > { %1083 = vst.msk [vmem:[%s2462_s21 + $0x8] sm:$0xff] %vm627_vm0, %v1082_v3 }
 0x232   : > { %v857_v4 = vpop.f32.mrf.mxu2 }
 0x233   : > { %v1044_v5 = vpop.f32.mrf.mxu3 }
 0x235   : > { %v969_v6 = vpop.f32.mrf.mxu1 }
 0x236   : > { %v1211_v7 = vpop.f32.mrf.mxu0 }
 0x237   : > { %1215 = vrot.lane.b32.xlu0 %v1211_v7, %s2234_s0 }
 0x238   : > { %v1084_v9 = vld [vmem:[%s2462_s21 + $0x8] sm:$0xff] }
 0x23b   : > { %v1007_v8 = vpop.f32.mrf.mxu2 }
 0x23c   : > { %v1174_v10 = vpop.f32.mrf.mxu3 }
 0x23d   : > { %1178 = vrot.lane.b32.xlu1 %v1174_v10, %s2234_s0  ;;  %v1110_v11 = vpop.f32.mrf.mxu1 }
 0x23e   : > { %v1113_v12 = vadd.f32 %v1110_v11, %v1084_v9 }
 0x23f   : > { %861 = vrot.lane.b32.xlu0 %v857_v4, %s2233_s10 }
 0x240   : > { %1114 = vst.msk [vmem:[%s2462_s21 + $0x8] sm:$0xff] %vm627_vm0, %v1113_v12  ;;  %v1359_v19 = vpop.f32.mrf.mxu0 }
 0x244   : > { %v1141_v13 = vpop.f32.mrf.mxu2 }
 0x245   : > { %824 = vrot.lane.b32.xlu1 %v820_v1, %s2234_s0  ;;  %v1248_v14 = vpop.f32.mrf.mxu1  ;;  %v1322_v15 = vpop.f32.mrf.mxu3 }
 0x246   : > { %1252 = vrot.lane.b32.xlu2 %v1248_v14, %s2234_s0 }
 0x247   : > { %v1115_v16 = vld [vmem:[%s2462_s21 + $0x8] sm:$0xff]  ;;  %1326 = vrot.lane.b32.xlu0 %v1322_v15, %s2233_s10 }
 0x248   : > { %v1144_v17 = vadd.f32 %v1141_v13, %v1115_v16 }
 0x24a   : > { %1145 = vst.msk [vmem:[%s2462_s21 + $0x8] sm:$0xff] %vm627_vm0, %v1144_v17 }
 0x24c   : > { %v1285_v18 = vpop.f32.mrf.mxu2 }
 0x24d   : > { %1289 = vrot.lane.b32.xlu1 %v1285_v18, %s2233_s10  ;;  %v1396_v21 = vpop.f32.mrf.mxu1  ;;  %v1470_v22 = vpop.f32.mrf.mxu3 }
 0x24e   : > { %899 = vrot.lane.b32.xlu2 %v895_v0, %s2233_s10 }
 0x24f   : > { %973 = vrot.lane.b32.xlu0 %v969_v6, %s2232_s30 }
 0x251   : > { %v1146_v30 = vld [vmem:[%s2462_s21 + $0x8] sm:$0xff] }
 0x254   : > { %v1433_v20 = vpop.f32.mrf.mxu2 }
 0x255   : > { %936 = vrot.lane.b32.xlu1 %v932_v63, %s2233_s10 }
 0x256   : > { %1363 = vrot.lane.b32.xlu2 %v1359_v19, %s2233_s10 }
 0x257   : > { %1437 = vrot.lane.b32.xlu0 %v1433_v20, %s2232_s30 }
 0x25d   : > { %1400 = vrot.lane.b32.xlu1 %v1396_v21, %s2232_s30 }
 0x25e   : > { %1011 = vrot.lane.b32.xlu2 %v1007_v8, %s2232_s30 }
 0x265   : > { %1048 = vrot.lane.b32.xlu1 %v1044_v5, %s2232_s30 }
 0x266   : > { %1474 = vrot.lane.b32.xlu2 %v1470_v22, %s2232_s30 }
 0x277   : > { %v788_v26 = vpop.permute.xlu2 %787 }
 0x296   : > { %v750_v23 = vpop.permute.xlu0 %749 }
 0x297   : > { %v752_v25 = vadd.f32 %v750_v23, %v717_v24 }
 0x299   : > { %754 = vst.msk [vmem:[%s2462_s21] sm:$0xff] %vm753_vm1, %v752_v25 }
 0x2a0   : > { %v755_v27 = vld [vmem:[%s2462_s21] sm:$0xff]  ;;  %v1253_v38 = vpop.permute.xlu2 %1252 }
 0x2a1   : > { %v790_v28 = vadd.f32 %v788_v26, %v755_v27 }
 0x2a3   : > { %791 = vst.msk [vmem:[%s2462_s21] sm:$0xff] %vm753_vm1, %v790_v28 }
 0x2a8   : > { %v900_v44 = vpop.permute.xlu2 %899 }
 0x2a9   : > { %v1216_v32 = vpop.permute.xlu0 %1215 }
 0x2aa   : > { %v792_v34 = vld [vmem:[%s2462_s21] sm:$0xff] }
 0x2af   : > { %v1179_v29 = vpop.permute.xlu1 %1178 }
 0x2b0   : > { %v1181_v31 = vadd.f32 %v1179_v29, %v1146_v30  ;;  %v1364_v56 = vpop.permute.xlu2 %1363 }
 0x2b1   : > { %v862_v39 = vpop.permute.xlu0 %861 }
 0x2b2   : > { %1182 = vst.msk [vmem:[%s2462_s21 + $0x8] sm:$0xff] %vm753_vm1, %v1181_v31 }
 0x2b7   : > { %v825_v33 = vpop.permute.xlu1 %824 }
 0x2b8   : > { %v827_v35 = vadd.f32 %v825_v33, %v792_v34  ;;  %v1012_v62 = vpop.permute.xlu2 %1011 }
 0x2b9   : > { %v1183_v36 = vld [vmem:[%s2462_s21 + $0x8] sm:$0xff]  ;;  %v1327_v50 = vpop.permute.xlu0 %1326 }
 0x2ba   : > { %v1218_v37 = vadd.f32 %v1216_v32, %v1183_v36  ;;  %828 = vst.msk [vmem:[%s2462_s21] sm:$0xff] %vm753_vm1, %v827_v35 }
 0x2bc   : > { %1219 = vst.msk [vmem:[%s2462_s21 + $0x8] sm:$0xff] %vm753_vm1, %v1218_v37 }
 0x2bf   : > { %v1290_v45 = vpop.permute.xlu1 %1289 }
 0x2c0   : > { %v1475_v10 = vpop.permute.xlu2 %1474 }
 0x2c1   : > { %v829_v40 = vld [vmem:[%s2462_s21] sm:$0xff]  ;;  %v974_v57 = vpop.permute.xlu0 %973 }
 0x2c2   : > { %v864_v41 = vadd.f32 %v862_v39, %v829_v40 }
 0x2c3   : > { %v1220_v42 = vld [vmem:[%s2462_s21 + $0x8] sm:$0xff] }
 0x2c4   : > { %866 = vst.msk [vmem:[%s2462_s21] sm:$0xff] %vm865_vm2, %v864_v41  ;;  %v1255_v43 = vadd.f32 %v1253_v38, %v1220_v42 }
 0x2c6   : > { %1256 = vst.msk [vmem:[%s2462_s21 + $0x8] sm:$0xff] %vm753_vm1, %v1255_v43 }
 0x2c7   : > { %v937_v51 = vpop.permute.xlu1 %936 }
 0x2c9   : > { %v1438_v6 = vpop.permute.xlu0 %1437 }
 0x2cb   : > { %v867_v46 = vld [vmem:[%s2462_s21] sm:$0xff] }
 0x2cc   : > { %v902_v47 = vadd.f32 %v900_v44, %v867_v46 }
 0x2cd   : > { %v1257_v48 = vld [vmem:[%s2462_s21 + $0x8] sm:$0xff] }
 0x2ce   : > { %v1292_v49 = vadd.f32 %v1290_v45, %v1257_v48  ;;  %903 = vst.msk [vmem:[%s2462_s21] sm:$0xff] %vm865_vm2, %v902_v47 }
 0x2cf   : > { %v1401_v63 = vpop.permute.xlu1 %1400 }
 0x2d0   : > { %1293 = vst.msk [vmem:[%s2462_s21 + $0x8] sm:$0xff] %vm865_vm2, %v1292_v49 }
 0x2d5   : > { %v904_v52 = vld [vmem:[%s2462_s21] sm:$0xff] }
 0x2d6   : > { %v939_v53 = vadd.f32 %v937_v51, %v904_v52 }
 0x2d7   : > { %v1294_v54 = vld [vmem:[%s2462_s21 + $0x8] sm:$0xff]  ;;  %v1049_v4 = vpop.permute.xlu1 %1048 }
 0x2d8   : > { %v1329_v55 = vadd.f32 %v1327_v50, %v1294_v54  ;;  %940 = vst.msk [vmem:[%s2462_s21] sm:$0xff] %vm865_vm2, %v939_v53 }
 0x2da   : > { %1330 = vst.msk [vmem:[%s2462_s21 + $0x8] sm:$0xff] %vm865_vm2, %v1329_v55 }
 0x2df   : > { %v941_v58 = vld [vmem:[%s2462_s21] sm:$0xff] }
 0x2e0   : > { %v976_v59 = vadd.f32 %v974_v57, %v941_v58 }
 0x2e1   : > { %v1331_v60 = vld [vmem:[%s2462_s21 + $0x8] sm:$0xff] }
 0x2e2   : > { %978 = vst.msk [vmem:[%s2462_s21] sm:$0xff] %vm977_vm3, %v976_v59  ;;  %v1366_v61 = vadd.f32 %v1364_v56, %v1331_v60 }
 0x2e4   : > { %1367 = vst.msk [vmem:[%s2462_s21 + $0x8] sm:$0xff] %vm865_vm2, %v1366_v61 }
 0x2e9   : > { %v979_v0 = vld [vmem:[%s2462_s21] sm:$0xff] }
 0x2ea   : > { %v1014_v1 = vadd.f32 %v1012_v62, %v979_v0 }
 0x2eb   : > { %v1368_v2 = vld [vmem:[%s2462_s21 + $0x8] sm:$0xff] }
 0x2ec   : > { %v1403_v3 = vadd.f32 %v1401_v63, %v1368_v2  ;;  %1015 = vst.msk [vmem:[%s2462_s21] sm:$0xff] %vm977_vm3, %v1014_v1 }
 0x2ee   : > { %1404 = vst.msk [vmem:[%s2462_s21 + $0x8] sm:$0xff] %vm977_vm3, %v1403_v3 }
 0x2f3   : > { %v1016_v5 = vld [vmem:[%s2462_s21] sm:$0xff] }
 0x2f4   : > { %v1051_v7 = vadd.f32 %v1049_v4, %v1016_v5 }
 0x2f5   : > { %v1405_v8 = vld [vmem:[%s2462_s21 + $0x8] sm:$0xff] }
 0x2f6   : > { %1052 = vst.msk [vmem:[%s2462_s21] sm:$0xff] %vm977_vm3, %v1051_v7  ;;  %v1440_v9 = vadd.f32 %v1438_v6, %v1405_v8 }
 0x2f8   : > { %1441 = vst.msk [vmem:[%s2462_s21 + $0x8] sm:$0xff] %vm977_vm3, %v1440_v9 }
 0x2ff   : > { %v1442_v11 = vld [vmem:[%s2462_s21 + $0x8] sm:$0xff] }
 0x300   : > { %v1477_v12 = vadd.f32 %v1475_v10, %v1442_v11 }
 0x302   : > { %1478 = vst.msk [vmem:[%s2462_s21 + $0x8] sm:$0xff] %vm977_vm3, %v1477_v12 }
 0x303 PF: > { %s2950_s29 = sld [smem:[#allocation18_spill]]  ;;  %s1493_s12 = sshll.u32 %s2462_s21, 4  ;;  %s1494_s12 = int_to_ptr.vmem [resolvable:$true] %s1493_s12 }
 0x304   : > { %s2953_s7 = sld [smem:[#allocation29_spill]]  ;;  %s1480_s18 = scalar_lea.sflag [#allocation5], %s289_s15 }
 0x309   : > { %s1829_s2 = sshll.u32 %s2950_s29, 4 }
 0x30a   : > { %s1491_s9 = scalar_lea.hbm %s2953_s7, %s1829_s2  ;;  %s2091_s0 = scalar_lea.hbm %s2953_s7, 32 }
 0x30b   : > { %s1495_s5 = sshll.u32 %s1491_s9, 4  ;;  %s1496_s5 = int_to_ptr.hbm [resolvable:$true] %s1495_s5 }
 0x30c   : > { %s2085_s13 = sshra.s32 %s1496_s5, 4  ;;  %s2086_s13 = int_to_ptr.hbm [resolvable:$true] %s2085_s13 }
 0x30d   : > { %s2087_s14 = scalar_lea.hbm %s2086_s13, 16  ;;  %p2092_p0 = scmp.lt.s32.totalorder %s2086_s13, %s2953_s7 }
 0x30e   : > { %p2088_p6 = scmp.ne.s32.totalorder %s2086_s13, %s2087_s14  ;;  %p2093_p2 = scmp.lt.s32.totalorder %s2091_s0, %s2087_s14 }
 0x310   : > { %p2089_p13 = pnand %p2088_p6, %p2350_p8  ;;  %p2094_p3 = por %p2093_p2, %p2092_p0 }
 0x312   : > { %p2090_p7 = pneg %p2089_p13 }
 0x314   : > { %p2095_p9 = pnand %p2094_p3, %p2090_p7 }
 0x316   : > { %2098 = shalt.err (!%p2095_p9)
}
 0x317   : > { %1840 = dma.vmem_to_hbm [thread:$0]  (%p2350_p8), %s1494_s12, 256, %s1496_s5, %s1480_s18  }
 0x318 PF: > { %s2954_s15 = sld [smem:[#allocation14_spill]]  ;;  %p1860_p5 = scmp.ge.s32.totalorder %s2225_s28, 2 }
 0x31a   : > { %p1854_p10 = pnand %p1860_p5, %p2356_p12 }
 0x31c   : > { %p1855_p11 = pneg %p1854_p10 }
 0x31e   : > { %s1507_s26 = sand.u32 1, %s2954_s15  }
 0x31f   : > { %s1508_s29 = scalar_lea.sflag [#allocation5], %s1507_s26 }
 0x320   : > { %2168 = dma.done.wait (%p1855_p11), %s1508_s29, 256  }
 0x321   : > { %2170 = vsyncadd (%p1855_p11), %s1508_s29, 4294967040  ;;  %s23_s28 = sadd.s32 1, %s2225_s28   ;;  %s2957_s15 = sld [smem:[#allocation15_spill]] }
 0x322   : > { %p2846_p4 = scmp.ge.s32.totalorder %s23_s28, 6   ;;  %s2958_s18 = sld [smem:[#allocation16_spill]] }
 0x323   : > { %s2959_s6 = sld [smem:[#allocation25_spill]]  ;;  %s2963_s16 = smov %s2181_s17 }
 0x324   : > { %s2960_s24 = sld [smem:[#allocation19_spill]]  ;;  %s2964_s17 = smov %s2422_s25 }
 0x325   : > { %s2961_s26 = sld [smem:[#allocation24_spill]]  ;;  %s2965_s19 = smov %s2193_s20 }
 0x326   : > { %s2966_s20 = smov %s2425_s3  ;;  %s2967_s21 = smov %s2201_s22 }
 0x327   : > { %s2968_s22 = smov %s2205_s23  ;;  %s2970_s25 = smov %s2221_s27 }
 0x328   : > { %s2971_s27 = smov %s2977_s8  ;;  %22 = sbr.rel (!%p2846_p4) target bundleno = 17 (0x11), region = 108 }
 0x329   : > { %s2969_s23 = smov %s2959_s6 }
 0x32d   :  { %1514 = vsyncpa [#allocation4], 1 }
 0x32e   :  { %1516 = vsyncpa [#allocation4 + $0x1], 1 }
 0x32f   :  { %1517 = vsyncpa [#allocation7], 1 }
 0x330   :  { %1519 = vsyncpa [#allocation7 + $0x1], 1 }
 0x331   :  { %1520 = vsyncpa [#allocation5], 1 }
 0x332   :  { %1522 = vsyncpa [#allocation5 + $0x1], 1 }

</bundles_post_ra>
